<compile_context>
chip_gen: v7x
topology: tpu7x:2x2x1
jax: 0.10.0
libtpu: 0.0.40
codegen_flags: <defaults>
</compile_context>

<pallas_src>
import jax
import jax.numpy as jnp
import numpy as np
from jax.experimental import pallas as pl
from jax.experimental.pallas import tpu as pltpu

LANE = 128  # pad feature / hidden / class dims to one full vreg lane width


# ----------------------------------------------------------------------------
# Fused Pallas kernel: all GIN layers + MLP head + log_softmax for one slab
# ----------------------------------------------------------------------------
def gin_fused_kernel(a_ref, x_ref, w_ref, c_ref, o_ref):
    """Whole GIN forward pass for one TM-node slab (TM = whole graphs).

    w_ref : [2L+2, 128, 128] bf16   (layer W1/W2 pairs, then lin1, lin2)
    c_ref : [3L+2, TM, 128]  f32    (rows 0..L-1: (1+eps_l) replicated;
                                     rows L+2l / L+2l+1: layer biases (BN folded);
                                     rows 3L / 3L+1: lin1 / lin2 biases,
                                     lin2 padded class columns biased -1e30)
    """
    num_layers = (w_ref.shape[0] - 2) // 2
    a = a_ref[...]                       # bf16 [TM, TM] block-diagonal slab
    x_f32 = x_ref[...]                   # f32  [TM, LANE]
    x_bf = x_f32.astype(jnp.bfloat16)    # bf16 copy, carried layer to layer

    for l in range(num_layers):          # static unroll
        agg = jnp.dot(a, x_bf, preferred_element_type=jnp.float32)
        h = c_ref[l] * x_f32 + agg                       # (1+eps)*x + sum_nbrs
        h1 = jnp.maximum(
            jnp.dot(h.astype(jnp.bfloat16), w_ref[2 * l],
                    preferred_element_type=jnp.float32)
            + c_ref[num_layers + 2 * l], 0.0)
        x_f32 = jnp.maximum(
            jnp.dot(h1.astype(jnp.bfloat16), w_ref[2 * l + 1],
                    preferred_element_type=jnp.float32)
            + c_ref[num_layers + 2 * l + 1], 0.0)
        x_bf = x_f32.astype(jnp.bfloat16)                # reused next layer/head

    # Head: relu(lin1) -> lin2 -> log_softmax over the lane axis
    # (padded class lanes carry a -1e30 bias, so the 128-lane softmax equals
    #  the num_classes softmax).
    h = jnp.maximum(
        jnp.dot(x_bf, w_ref[2 * num_layers],
                preferred_element_type=jnp.float32)
        + c_ref[3 * num_layers], 0.0)
    logits = (jnp.dot(h.astype(jnp.bfloat16), w_ref[2 * num_layers + 1],
                      preferred_element_type=jnp.float32)
              + c_ref[3 * num_layers + 1])
    m = jnp.max(logits, axis=-1, keepdims=True)
    s = logits - m
    lse = jnp.log(jnp.sum(jnp.exp(s), axis=-1, keepdims=True))
    o_ref[...] = s - lse


# ----------------------------------------------------------------------------
# Wrapper: one pallas_call, grid over node-row slabs (graph-aligned)
# ----------------------------------------------------------------------------
def pad_to(arr, shape):
    pads = [(0, t - s) for s, t in zip(arr.shape, shape)]
    return jnp.pad(arr, pads)


def gin_forward(params, x, adj, num_classes, *, nodes_per_graph, tm=128):
    n = x.shape[0]
    assert tm % nodes_per_graph == 0, "slab size must align to graph boundaries"
    n_pad = ((n + tm - 1) // tm) * tm
    x_pad = pad_to(x, (n_pad, LANE))                 # zero-pad feats + ghost rows
    adj_bf16 = pad_to(adj, (n_pad, n_pad)).astype(jnp.bfloat16)
    num_layers = int(params["eps"].shape[0])
    num_w = 2 * num_layers + 2
    num_c = 3 * num_layers + 2

    out = pl.pallas_call(
        gin_fused_kernel,
        out_shape=jax.ShapeDtypeStruct((n_pad, LANE), jnp.float32),
        grid=(n_pad // tm,),
        in_specs=[
            # A's diagonal block for this slab (block-diag batch => exact).
            pl.BlockSpec((tm, tm), lambda i: (i, i)),
            pl.BlockSpec((tm, LANE), lambda i: (i, 0)),
            # Weights / constants: same block every step -> resident in VMEM.
            pl.BlockSpec((num_w, LANE, LANE), lambda i: (0, 0, 0)),
            pl.BlockSpec((num_c, tm, LANE), lambda i: (0, 0, 0)),
        ],
        out_specs=pl.BlockSpec((tm, LANE), lambda i: (i, 0)),
        compiler_params=pltpu.CompilerParams(
            dimension_semantics=("parallel",)),      # v7x: slabs across 2 TCs
    )(adj_bf16, x_pad, params["w"], params["c"])
    return out[:n, :num_classes]


# ----------------------------------------------------------------------------
# Parameter construction (deterministic, PyTorch-shaped, BN folded, padded)
# ----------------------------------------------------------------------------
def linear_params(key, fan_in, fan_out):
    """PyTorch nn.Linear default init (kaiming uniform), stored as [in, out]."""
    kw, kb = jax.random.split(key)
    bound = float(np.sqrt(1.0 / fan_in))
    w = jax.random.uniform(kw, (fan_in, fan_out), jnp.float32, -bound, bound)
    b = jax.random.uniform(kb, (1, fan_out), jnp.float32, -bound, bound)
    return w, b


def fold_batchnorm(w, b, gamma, beta, running_mean, running_var, bn_eps=1e-5):
    """Exactly fold eval-mode BatchNorm1d into the preceding Linear."""
    scale = gamma / jnp.sqrt(running_var + bn_eps)
    w_f = w * scale[None, :]
    b_f = (b - running_mean[None, :]) * scale[None, :] + beta[None, :]
    return w_f, b_f


def build_gin_params(key, num_features, hidden_dim, hidden_dim_post,
                     num_classes, num_layers, tm):
    keys = jax.random.split(key, num_layers * 2 + 2)
    eps = jnp.zeros((num_layers,), jnp.float32)          # GINConv train_eps init

    def rep(row_1xL):                                    # [1,LANE] -> [tm,LANE]
        return jnp.broadcast_to(row_1xL, (tm, LANE))

    w_list, bias_list, raw_layers = [], [], []
    for i in range(num_layers):
        in_dim = num_features if i == 0 else hidden_dim
        w1, b1 = linear_params(keys[2 * i], in_dim, hidden_dim)
        w2, b2 = linear_params(keys[2 * i + 1], hidden_dim, hidden_dim)
        # BatchNorm1d at init: gamma=1, beta=0, running_mean=0, running_var=1
        ones = jnp.ones((hidden_dim,), jnp.float32)
        zeros = jnp.zeros((hidden_dim,), jnp.float32)
        w1, b1 = fold_batchnorm(w1, b1, ones, zeros, zeros, ones)
        w2, b2 = fold_batchnorm(w2, b2, ones, zeros, zeros, ones)
        raw_layers.append((w1, b1, w2, b2))
        w_list += [pad_to(w1, (LANE, LANE)), pad_to(w2, (LANE, LANE))]
        bias_list += [rep(pad_to(b1, (1, LANE))), rep(pad_to(b2, (1, LANE)))]

    wl1, bl1 = linear_params(keys[-2], hidden_dim, hidden_dim_post)
    wl2, bl2 = linear_params(keys[-1], hidden_dim_post, num_classes)
    # Padded logit columns get a huge negative bias so exp() underflows to 0
    # and the 128-lane log_softmax equals the num_classes log_softmax.
    neg = jnp.full((1, LANE - num_classes), -1e30, jnp.float32)
    bl2_pad = jnp.concatenate([bl2, neg], axis=1)
    w_list += [pad_to(wl1, (LANE, LANE)), pad_to(wl2, (LANE, LANE))]
    bias_list += [rep(pad_to(bl1, (1, LANE))), rep(bl2_pad)]

    # (1 + eps_l), replicated to a full [tm, LANE] slab per layer.
    scales = jnp.broadcast_to((1.0 + eps)[:, None, None],
                              (num_layers, tm, LANE))

    params = {
        "eps": eps,
        "w": jnp.stack(w_list).astype(jnp.bfloat16),          # [2L+2,128,128]
        "c": jnp.concatenate([scales, jnp.stack(bias_list)], 0),  # [3L+2,tm,128] f32
        # Unpadded f32 copies, only used by the pure-JAX sanity reference.
        "raw": {"layers": raw_layers, "lin1": (wl1, bl1), "lin2": (wl2, bl2)},
    }
    return params


# ----------------------------------------------------------------------------
# Pure-JAX references (for correctness checks)
# ----------------------------------------------------------------------------
def gin_forward_ref_bf16(params, x, adj, num_classes, *, tm):
    """Mirror of the kernel math (same padded bf16 operands, full-array)."""
    n = x.shape[0]
    n_pad = ((n + tm - 1) // tm) * tm
    h32 = pad_to(x, (n_pad, LANE))
    a = pad_to(adj, (n_pad, n_pad)).astype(jnp.bfloat16)
    w, c = params["w"], params["c"]
    num_layers = int(params["eps"].shape[0])
    hbf = h32.astype(jnp.bfloat16)
    for l in range(num_layers):
        agg = jnp.dot(a, hbf, preferred_element_type=jnp.float32)
        z = c[l, 0, 0] * h32 + agg
        z = jnp.maximum(jnp.dot(z.astype(jnp.bfloat16), w[2 * l],
                                preferred_element_type=jnp.float32)
                        + c[num_layers + 2 * l, 0:1], 0.0)
        h32 = jnp.maximum(jnp.dot(z.astype(jnp.bfloat16), w[2 * l + 1],
                                  preferred_element_type=jnp.float32)
                          + c[num_layers + 2 * l + 1, 0:1], 0.0)
        hbf = h32.astype(jnp.bfloat16)
    z = jnp.maximum(jnp.dot(hbf, w[2 * num_layers],
                            preferred_element_type=jnp.float32)
                    + c[3 * num_layers, 0:1], 0.0)
    logits = (jnp.dot(z.astype(jnp.bfloat16), w[2 * num_layers + 1],
                      preferred_element_type=jnp.float32)
              + c[3 * num_layers + 1, 0:1])
    return jax.nn.log_softmax(logits, axis=-1)[:n, :num_classes]


def gin_forward_ref_f32(params, x, adj):
    """Unpadded full-f32 reference of the original module semantics (eval)."""
    h = x
    eps = params["eps"]
    for l, (w1, b1, w2, b2) in enumerate(params["raw"]["layers"]):
        z = (1.0 + eps[l]) * h + adj @ h
        z = jnp.maximum(z @ w1 + b1, 0.0)
        z = jnp.maximum(z @ w2 + b2, 0.0)
        h = jnp.maximum(z, 0.0)            # outer F.relu (idempotent)
    wl1, bl1 = params["raw"]["lin1"]
    wl2, bl2 = params["raw"]["lin2"]
    h = jnp.maximum(h @ wl1 + bl1, 0.0)
    return jax.nn.log_softmax(h @ wl2 + bl2, axis=-1)


# ----------------------------------------------------------------------------
# Main
# ----------------------------------------------------------------------------
if __name__ == "__main__":
    # Batch of small synthetic graphs (stacked nodes, block-diagonal adjacency).
    num_graphs = 8
    nodes_per_graph = 32
    num_features = 16
    hidden_dim = 32
    hidden_dim_post = 32
    num_classes = 8
    num_layers = 3
    edges_per_graph = 96
    TM = 128                                  # node-row slab (4 graphs / slab)

    key = jax.random.PRNGKey(0)
    k_x, k_e, k_p = jax.random.split(key, 3)

    n_total = num_graphs * nodes_per_graph
    x = jax.random.normal(k_x, (n_total, num_features), jnp.float32)

    # Per-graph random edge_index [2, E]; offsets make the batched adjacency
    # block-diagonal: A[dst, src] += 1 (multi-edges accumulate).
    srcs, dsts = [], []
    for g, k_g in enumerate(jax.random.split(k_e, num_graphs)):
        ei = jax.random.randint(k_g, (2, edges_per_graph), 0, nodes_per_graph,
                                dtype=jnp.int32) + g * nodes_per_graph
        srcs.append(ei[0]); dsts.append(ei[1])
    src = jnp.concatenate(srcs)
    dst = jnp.concatenate(dsts)
    adj = jnp.zeros((n_total, n_total), jnp.float32).at[dst, src].add(1.0)
    # bf16 adjacency is exact only while edge multiplicity stays <= 256.
    assert float(adj.max()) <= 256.0

    params = build_gin_params(k_p, num_features, hidden_dim, hidden_dim_post,
                              num_classes, num_layers, TM)

    out = gin_forward(params, x, adj, num_classes,
                      nodes_per_graph=nodes_per_graph, tm=TM)
    out = jax.block_until_ready(out)
    assert out.shape == (n_total, num_classes)

    # 1) Exact-math check vs a JAX reference using the same bf16/padded params.
    ref_bf16 = gin_forward_ref_bf16(params, x, adj, num_classes, tm=TM)
    np.testing.assert_allclose(np.asarray(out), np.asarray(ref_bf16),
                               rtol=1e-3, atol=1e-3)

    # 2) Semantics check vs the unpadded full-f32 reference (tolerance covers
    #    only the bf16 MXU-operand rounding accumulated over the layers).
    ref_f32 = gin_forward_ref_f32(params, x, adj)
    np.testing.assert_allclose(np.asarray(out), np.asarray(ref_f32),
                               rtol=0.15, atol=0.15)

    # 3) Output rows are valid log-probabilities (padded class lanes ignored).
    np.testing.assert_allclose(np.exp(np.asarray(out)).sum(-1),
                               np.ones(n_total), rtol=1e-4, atol=1e-4)

    print("KERNEL_OK")
</pallas_src>

<mosaic_0001>
module attributes {stable_mosaic.version = 11 : i64} {
  func.func @gin_fused_kernel(%arg0: i32, %arg1: memref<128x128xbf16, #tpu.memory_space<vmem>>, %arg2: memref<128x128xf32, #tpu.memory_space<vmem>>, %arg3: memref<8x128x128xbf16, #tpu.memory_space<vmem>>, %arg4: memref<11x128x128xf32, #tpu.memory_space<vmem>>, %arg5: memref<128x128xf32, #tpu.memory_space<vmem>>) attributes {dimension_semantics = [#tpu.dimension_semantics<parallel>], iteration_bounds = array<i64: 2>, scalar_prefetch = 0 : i64, scratch_operands = 0 : i64, tpu.core_type = #tpu.core_type<tc>, window_params = [{transform_indices = @transform_0, window_bounds = array<i64: 128, 128>}, {transform_indices = @transform_1, window_bounds = array<i64: 128, 128>}, {pipeline_mode = #tpu.pipeline_mode<synchronous>, transform_indices = @transform_2, window_bounds = array<i64: 8, 128, 128>}, {pipeline_mode = #tpu.pipeline_mode<synchronous>, transform_indices = @transform_3, window_bounds = array<i64: 11, 128, 128>}, {transform_indices = @transform_4, window_bounds = array<i64: 128, 128>}]} {
    %c0 = arith.constant 0 : index
    %c0_0 = arith.constant 0 : index
    %0 = vector.load %arg1[%c0, %c0_0] : memref<128x128xbf16, #tpu.memory_space<vmem>>, vector<128x128xbf16>
    %c0_1 = arith.constant 0 : index
    %c0_2 = arith.constant 0 : index
    %1 = vector.load %arg2[%c0_1, %c0_2] : memref<128x128xf32, #tpu.memory_space<vmem>>, vector<128x128xf32>
    %2 = arith.truncf %1 : vector<128x128xf32> to vector<128x128xbf16>
    %cst = arith.constant dense<0.000000e+00> : vector<128x128xf32>
    %3 = tpu.matmul %0, %2, %cst {dimension_numbers = #tpu.dot_dimension_numbers<[1], [0], [0], [1], [0, 0, 1, 1], [], []>} : vector<128x128xbf16>, vector<128x128xbf16>, vector<128x128xf32> -> vector<128x128xf32>
    %c0_3 = arith.constant 0 : index
    %c0_4 = arith.constant 0 : index
    %c0_5 = arith.constant 0 : index
    %4 = vector.load %arg4[%c0_3, %c0_4, %c0_5] : memref<11x128x128xf32, #tpu.memory_space<vmem>>, vector<1x128x128xf32>
    %5 = vector.shape_cast %4 : vector<1x128x128xf32> to vector<128x128xf32>
    %6 = arith.mulf %5, %1 : vector<128x128xf32>
    %7 = arith.addf %6, %3 : vector<128x128xf32>
    %8 = arith.truncf %7 : vector<128x128xf32> to vector<128x128xbf16>
    %c0_6 = arith.constant 0 : index
    %c0_7 = arith.constant 0 : index
    %c0_8 = arith.constant 0 : index
    %9 = vector.load %arg3[%c0_6, %c0_7, %c0_8] : memref<8x128x128xbf16, #tpu.memory_space<vmem>>, vector<1x128x128xbf16>
    %10 = vector.shape_cast %9 : vector<1x128x128xbf16> to vector<128x128xbf16>
    %cst_9 = arith.constant dense<0.000000e+00> : vector<128x128xf32>
    %11 = tpu.matmul %8, %10, %cst_9 {dimension_numbers = #tpu.dot_dimension_numbers<[1], [0], [0], [1], [0, 0, 1, 1], [], []>} : vector<128x128xbf16>, vector<128x128xbf16>, vector<128x128xf32> -> vector<128x128xf32>
    %c3 = arith.constant 3 : index
    %c0_10 = arith.constant 0 : index
    %c0_11 = arith.constant 0 : index
    %12 = vector.load %arg4[%c3, %c0_10, %c0_11] : memref<11x128x128xf32, #tpu.memory_space<vmem>>, vector<1x128x128xf32>
    %13 = vector.shape_cast %12 : vector<1x128x128xf32> to vector<128x128xf32>
    %14 = arith.addf %11, %13 : vector<128x128xf32>
    %cst_12 = arith.constant 0.000000e+00 : f32
    %15 = vector.broadcast %cst_12 : f32 to vector<128x128xf32>
    %16 = arith.maximumf %14, %15 : vector<128x128xf32>
    %17 = arith.truncf %16 : vector<128x128xf32> to vector<128x128xbf16>
    %c1 = arith.constant 1 : index
    %c0_13 = arith.constant 0 : index
    %c0_14 = arith.constant 0 : index
    %18 = vector.load %arg3[%c1, %c0_13, %c0_14] : memref<8x128x128xbf16, #tpu.memory_space<vmem>>, vector<1x128x128xbf16>
    %19 = vector.shape_cast %18 : vector<1x128x128xbf16> to vector<128x128xbf16>
    %cst_15 = arith.constant dense<0.000000e+00> : vector<128x128xf32>
    %20 = tpu.matmul %17, %19, %cst_15 {dimension_numbers = #tpu.dot_dimension_numbers<[1], [0], [0], [1], [0, 0, 1, 1], [], []>} : vector<128x128xbf16>, vector<128x128xbf16>, vector<128x128xf32> -> vector<128x128xf32>
    %c4 = arith.constant 4 : index
    %c0_16 = arith.constant 0 : index
    %c0_17 = arith.constant 0 : index
    %21 = vector.load %arg4[%c4, %c0_16, %c0_17] : memref<11x128x128xf32, #tpu.memory_space<vmem>>, vector<1x128x128xf32>
    %22 = vector.shape_cast %21 : vector<1x128x128xf32> to vector<128x128xf32>
    %23 = arith.addf %20, %22 : vector<128x128xf32>
    %cst_18 = arith.constant 0.000000e+00 : f32
    %24 = vector.broadcast %cst_18 : f32 to vector<128x128xf32>
    %25 = arith.maximumf %23, %24 : vector<128x128xf32>
    %26 = arith.truncf %25 : vector<128x128xf32> to vector<128x128xbf16>
    %cst_19 = arith.constant dense<0.000000e+00> : vector<128x128xf32>
    %27 = tpu.matmul %0, %26, %cst_19 {dimension_numbers = #tpu.dot_dimension_numbers<[1], [0], [0], [1], [0, 0, 1, 1], [], []>} : vector<128x128xbf16>, vector<128x128xbf16>, vector<128x128xf32> -> vector<128x128xf32>
    %c1_20 = arith.constant 1 : index
    %c0_21 = arith.constant 0 : index
    %c0_22 = arith.constant 0 : index
    %28 = vector.load %arg4[%c1_20, %c0_21, %c0_22] : memref<11x128x128xf32, #tpu.memory_space<vmem>>, vector<1x128x128xf32>
    %29 = vector.shape_cast %28 : vector<1x128x128xf32> to vector<128x128xf32>
    %30 = arith.mulf %29, %25 : vector<128x128xf32>
    %31 = arith.addf %30, %27 : vector<128x128xf32>
    %32 = arith.truncf %31 : vector<128x128xf32> to vector<128x128xbf16>
    %c2 = arith.constant 2 : index
    %c0_23 = arith.constant 0 : index
    %c0_24 = arith.constant 0 : index
    %33 = vector.load %arg3[%c2, %c0_23, %c0_24] : memref<8x128x128xbf16, #tpu.memory_space<vmem>>, vector<1x128x128xbf16>
    %34 = vector.shape_cast %33 : vector<1x128x128xbf16> to vector<128x128xbf16>
    %cst_25 = arith.constant dense<0.000000e+00> : vector<128x128xf32>
    %35 = tpu.matmul %32, %34, %cst_25 {dimension_numbers = #tpu.dot_dimension_numbers<[1], [0], [0], [1], [0, 0, 1, 1], [], []>} : vector<128x128xbf16>, vector<128x128xbf16>, vector<128x128xf32> -> vector<128x128xf32>
    %c5 = arith.constant 5 : index
    %c0_26 = arith.constant 0 : index
    %c0_27 = arith.constant 0 : index
    %36 = vector.load %arg4[%c5, %c0_26, %c0_27] : memref<11x128x128xf32, #tpu.memory_space<vmem>>, vector<1x128x128xf32>
    %37 = vector.shape_cast %36 : vector<1x128x128xf32> to vector<128x128xf32>
    %38 = arith.addf %35, %37 : vector<128x128xf32>
    %cst_28 = arith.constant 0.000000e+00 : f32
    %39 = vector.broadcast %cst_28 : f32 to vector<128x128xf32>
    %40 = arith.maximumf %38, %39 : vector<128x128xf32>
    %41 = arith.truncf %40 : vector<128x128xf32> to vector<128x128xbf16>
    %c3_29 = arith.constant 3 : index
    %c0_30 = arith.constant 0 : index
    %c0_31 = arith.constant 0 : index
    %42 = vector.load %arg3[%c3_29, %c0_30, %c0_31] : memref<8x128x128xbf16, #tpu.memory_space<vmem>>, vector<1x128x128xbf16>
    %43 = vector.shape_cast %42 : vector<1x128x128xbf16> to vector<128x128xbf16>
    %cst_32 = arith.constant dense<0.000000e+00> : vector<128x128xf32>
    %44 = tpu.matmul %41, %43, %cst_32 {dimension_numbers = #tpu.dot_dimension_numbers<[1], [0], [0], [1], [0, 0, 1, 1], [], []>} : vector<128x128xbf16>, vector<128x128xbf16>, vector<128x128xf32> -> vector<128x128xf32>
    %c6 = arith.constant 6 : index
    %c0_33 = arith.constant 0 : index
    %c0_34 = arith.constant 0 : index
    %45 = vector.load %arg4[%c6, %c0_33, %c0_34] : memref<11x128x128xf32, #tpu.memory_space<vmem>>, vector<1x128x128xf32>
    %46 = vector.shape_cast %45 : vector<1x128x128xf32> to vector<128x128xf32>
    %47 = arith.addf %44, %46 : vector<128x128xf32>
    %cst_35 = arith.constant 0.000000e+00 : f32
    %48 = vector.broadcast %cst_35 : f32 to vector<128x128xf32>
    %49 = arith.maximumf %47, %48 : vector<128x128xf32>
    %50 = arith.truncf %49 : vector<128x128xf32> to vector<128x128xbf16>
    %cst_36 = arith.constant dense<0.000000e+00> : vector<128x128xf32>
    %51 = tpu.matmul %0, %50, %cst_36 {dimension_numbers = #tpu.dot_dimension_numbers<[1], [0], [0], [1], [0, 0, 1, 1], [], []>} : vector<128x128xbf16>, vector<128x128xbf16>, vector<128x128xf32> -> vector<128x128xf32>
    %c2_37 = arith.constant 2 : index
    %c0_38 = arith.constant 0 : index
    %c0_39 = arith.constant 0 : index
    %52 = vector.load %arg4[%c2_37, %c0_38, %c0_39] : memref<11x128x128xf32, #tpu.memory_space<vmem>>, vector<1x128x128xf32>
    %53 = vector.shape_cast %52 : vector<1x128x128xf32> to vector<128x128xf32>
    %54 = arith.mulf %53, %49 : vector<128x128xf32>
    %55 = arith.addf %54, %51 : vector<128x128xf32>
    %56 = arith.truncf %55 : vector<128x128xf32> to vector<128x128xbf16>
    %c4_40 = arith.constant 4 : index
    %c0_41 = arith.constant 0 : index
    %c0_42 = arith.constant 0 : index
    %57 = vector.load %arg3[%c4_40, %c0_41, %c0_42] : memref<8x128x128xbf16, #tpu.memory_space<vmem>>, vector<1x128x128xbf16>
    %58 = vector.shape_cast %57 : vector<1x128x128xbf16> to vector<128x128xbf16>
    %cst_43 = arith.constant dense<0.000000e+00> : vector<128x128xf32>
    %59 = tpu.matmul %56, %58, %cst_43 {dimension_numbers = #tpu.dot_dimension_numbers<[1], [0], [0], [1], [0, 0, 1, 1], [], []>} : vector<128x128xbf16>, vector<128x128xbf16>, vector<128x128xf32> -> vector<128x128xf32>
    %c7 = arith.constant 7 : index
    %c0_44 = arith.constant 0 : index
    %c0_45 = arith.constant 0 : index
    %60 = vector.load %arg4[%c7, %c0_44, %c0_45] : memref<11x128x128xf32, #tpu.memory_space<vmem>>, vector<1x128x128xf32>
    %61 = vector.shape_cast %60 : vector<1x128x128xf32> to vector<128x128xf32>
    %62 = arith.addf %59, %61 : vector<128x128xf32>
    %cst_46 = arith.constant 0.000000e+00 : f32
    %63 = vector.broadcast %cst_46 : f32 to vector<128x128xf32>
    %64 = arith.maximumf %62, %63 : vector<128x128xf32>
    %65 = arith.truncf %64 : vector<128x128xf32> to vector<128x128xbf16>
    %c5_47 = arith.constant 5 : index
    %c0_48 = arith.constant 0 : index
    %c0_49 = arith.constant 0 : index
    %66 = vector.load %arg3[%c5_47, %c0_48, %c0_49] : memref<8x128x128xbf16, #tpu.memory_space<vmem>>, vector<1x128x128xbf16>
    %67 = vector.shape_cast %66 : vector<1x128x128xbf16> to vector<128x128xbf16>
    %cst_50 = arith.constant dense<0.000000e+00> : vector<128x128xf32>
    %68 = tpu.matmul %65, %67, %cst_50 {dimension_numbers = #tpu.dot_dimension_numbers<[1], [0], [0], [1], [0, 0, 1, 1], [], []>} : vector<128x128xbf16>, vector<128x128xbf16>, vector<128x128xf32> -> vector<128x128xf32>
    %c8 = arith.constant 8 : index
    %c0_51 = arith.constant 0 : index
    %c0_52 = arith.constant 0 : index
    %69 = vector.load %arg4[%c8, %c0_51, %c0_52] : memref<11x128x128xf32, #tpu.memory_space<vmem>>, vector<1x128x128xf32>
    %70 = vector.shape_cast %69 : vector<1x128x128xf32> to vector<128x128xf32>
    %71 = arith.addf %68, %70 : vector<128x128xf32>
    %cst_53 = arith.constant 0.000000e+00 : f32
    %72 = vector.broadcast %cst_53 : f32 to vector<128x128xf32>
    %73 = arith.maximumf %71, %72 : vector<128x128xf32>
    %74 = arith.truncf %73 : vector<128x128xf32> to vector<128x128xbf16>
    %c6_54 = arith.constant 6 : index
    %c0_55 = arith.constant 0 : index
    %c0_56 = arith.constant 0 : index
    %75 = vector.load %arg3[%c6_54, %c0_55, %c0_56] : memref<8x128x128xbf16, #tpu.memory_space<vmem>>, vector<1x128x128xbf16>
    %76 = vector.shape_cast %75 : vector<1x128x128xbf16> to vector<128x128xbf16>
    %cst_57 = arith.constant dense<0.000000e+00> : vector<128x128xf32>
    %77 = tpu.matmul %74, %76, %cst_57 {dimension_numbers = #tpu.dot_dimension_numbers<[1], [0], [0], [1], [0, 0, 1, 1], [], []>} : vector<128x128xbf16>, vector<128x128xbf16>, vector<128x128xf32> -> vector<128x128xf32>
    %c9 = arith.constant 9 : index
    %c0_58 = arith.constant 0 : index
    %c0_59 = arith.constant 0 : index
    %78 = vector.load %arg4[%c9, %c0_58, %c0_59] : memref<11x128x128xf32, #tpu.memory_space<vmem>>, vector<1x128x128xf32>
    %79 = vector.shape_cast %78 : vector<1x128x128xf32> to vector<128x128xf32>
    %80 = arith.addf %77, %79 : vector<128x128xf32>
    %cst_60 = arith.constant 0.000000e+00 : f32
    %81 = vector.broadcast %cst_60 : f32 to vector<128x128xf32>
    %82 = arith.maximumf %80, %81 : vector<128x128xf32>
    %83 = arith.truncf %82 : vector<128x128xf32> to vector<128x128xbf16>
    %c7_61 = arith.constant 7 : index
    %c0_62 = arith.constant 0 : index
    %c0_63 = arith.constant 0 : index
    %84 = vector.load %arg3[%c7_61, %c0_62, %c0_63] : memref<8x128x128xbf16, #tpu.memory_space<vmem>>, vector<1x128x128xbf16>
    %85 = vector.shape_cast %84 : vector<1x128x128xbf16> to vector<128x128xbf16>
    %cst_64 = arith.constant dense<0.000000e+00> : vector<128x128xf32>
    %86 = tpu.matmul %83, %85, %cst_64 {dimension_numbers = #tpu.dot_dimension_numbers<[1], [0], [0], [1], [0, 0, 1, 1], [], []>} : vector<128x128xbf16>, vector<128x128xbf16>, vector<128x128xf32> -> vector<128x128xf32>
    %c10 = arith.constant 10 : index
    %c0_65 = arith.constant 0 : index
    %c0_66 = arith.constant 0 : index
    %87 = vector.load %arg4[%c10, %c0_65, %c0_66] : memref<11x128x128xf32, #tpu.memory_space<vmem>>, vector<1x128x128xf32>
    %88 = vector.shape_cast %87 : vector<1x128x128xf32> to vector<128x128xf32>
    %89 = arith.addf %86, %88 : vector<128x128xf32>
    %cst_67 = arith.constant dense<0xFF800000> : vector<128xf32>
    %90 = vector.multi_reduction <maximumf>, %89, %cst_67 [1] : vector<128x128xf32> to vector<128xf32>
    %91 = vector.shape_cast %90 : vector<128xf32> to vector<128x1xf32>
    %92 = vector.broadcast %91 : vector<128x1xf32> to vector<128x128xf32>
    %93 = arith.subf %89, %92 : vector<128x128xf32>
    %94 = math.exp %93 : vector<128x128xf32>
    %cst_68 = arith.constant dense<0.000000e+00> : vector<128xf32>
    %95 = vector.multi_reduction <add>, %94, %cst_68 [1] : vector<128x128xf32> to vector<128xf32>
    %96 = vector.shape_cast %95 : vector<128xf32> to vector<128x1xf32>
    %97 = math.log %96 : vector<128x1xf32>
    %98 = vector.broadcast %97 : vector<128x1xf32> to vector<128x128xf32>
    %99 = arith.subf %93, %98 : vector<128x128xf32>
    %c0_69 = arith.constant 0 : index
    %c0_70 = arith.constant 0 : index
    %100 = vector.load %arg5[%c0_69, %c0_70] : memref<128x128xf32, #tpu.memory_space<vmem>>, vector<128x128xf32>
    tpu.vector_store %arg5[%c0_69, %c0_70], %99 {strides = array<i32>} : memref<128x128xf32, #tpu.memory_space<vmem>>, vector<128x128xf32>,
    return
  }
  func.func @transform_0(%arg0: i32) -> (i32, i32) {
    %c0_i32 = arith.constant 0 : i32
    return %arg0, %arg0 : i32, i32
  }
  func.func @transform_1(%arg0: i32) -> (i32, i32) {
    %c0_i32 = arith.constant 0 : i32
    %c0_i32_0 = arith.constant 0 : i32
    return %arg0, %c0_i32 : i32, i32
  }
  func.func @transform_2(%arg0: i32) -> (i32, i32, i32) {
    %c0_i32 = arith.constant 0 : i32
    %c0_i32_0 = arith.constant 0 : i32
    %c0_i32_1 = arith.constant 0 : i32
    %c0_i32_2 = arith.constant 0 : i32
    return %c0_i32, %c0_i32_0, %c0_i32_1 : i32, i32, i32
  }
  func.func @transform_3(%arg0: i32) -> (i32, i32, i32) {
    %c0_i32 = arith.constant 0 : i32
    %c0_i32_0 = arith.constant 0 : i32
    %c0_i32_1 = arith.constant 0 : i32
    %c0_i32_2 = arith.constant 0 : i32
    return %c0_i32, %c0_i32_0, %c0_i32_1 : i32, i32, i32
  }
  func.func @transform_4(%arg0: i32) -> (i32, i32) {
    %c0_i32 = arith.constant 0 : i32
    %c0_i32_0 = arith.constant 0 : i32
    return %arg0, %c0_i32 : i32, i32
  }
}

</mosaic_0001>

<bundles_post_ra>
// kernel: tpu_custom_call.1
= control target key start
LH: loop header
LB: loop body
LE: loop exit
PB: predicated region body
PF: predicated region fallthrough
CT: control target
= control target key end

     0   :  { %s4740_s0 = inlined_call_operand.hbm [shape: bf16[256,256], index: 0, kind: input, shape index: {}]   ;;  %s4741_s1 = inlined_call_operand.hbm [shape: f32[256,128], index: 1, kind: input, shape index: {}]   ;;  %s4742_s2 = inlined_call_operand.hbm [shape: bf16[8,128,128], index: 2, kind: input, shape index: {}]   ;;  %s4743_s3 = inlined_call_operand.hbm [shape: f32[11,128,128], index: 3, kind: input, shape index: {}]   ;;  %s4744_s4 = inlined_call_operand.hbm [shape: f32[256,128], index: 4, kind: output, shape index: {}]  }
   0x1   :  { %4755 = sst [smem:[#allocation16_spill]] %s4740_s0 }
   0x2   :  { %4756 = sst [smem:[#allocation17_spill]] %s4742_s2 }
   0x3   :  { %4757 = sst [smem:[#allocation18_spill]] %s4743_s3 }
   0x4   :  { %9 = vsyncpa [#allocation3], 0 }
   0x5   :  { %11 = vsyncpa [#allocation3 + $0x1], 0 }
   0x6   :  { %12 = vsyncpa [#allocation6], 0 }
   0x7   :  { %14 = vsyncpa [#allocation6 + $0x1], 0 }
   0x8   :  { %15 = vsyncpa [#allocation9], 0 }
   0x9   :  { %16 = vsyncpa [#allocation4], 0 }
   0xa   :  { %18 = vsyncpa [#allocation4 + $0x1], 0  ;;  %s3892_s15 = smov 0   ;;  %s3894_s16 = smov 0  }
   0xb   :  { %s3896_s17 = smov 0   ;;  %s3898_s18 = smov 0  }
   0xc   :  { %s3900_s19 = smov 0   ;;  %s3902_s20 = smov 0  }
   0xd   :  { %s3904_s21 = smov 0  }
   0xe LB: > { %s3926_s22 = sadd.s32 4294967295, %s3854_s21   ;;  %s2748_s23 = sadd.s32 4294967294, %s3854_s21   ;;  %s3854_s21 = sphi %s3904_s21, %s4791_s21   ;;  %s3850_s20 = sphi %s3902_s20, %s4790_s20   ;;  %s3846_s19 = sphi %s3900_s19, %s4789_s19   ;;  %s3842_s18 = sphi %s3898_s18, %s4788_s18   ;;  %s3838_s17 = sphi %s3896_s17, %s4787_s17   ;;  %s3834_s16 = sphi %s3894_s16, %s4786_s16   ;;  %s3830_s15 = sphi %s3892_s15, %s4785_s15  }
   0xf   : > { %p46_p0 = scmp.ne.s32.totalorder %s3846_s19, %s3842_s18  ;;  %p4745_p1 = scmp.eq.s32.totalorder %s3926_s22, 0 }
  0x10   : > { %p72_p2 = scmp.ne.s32.totalorder %s3834_s16, %s3830_s15  ;;  %p144_p5 = scmp.eq.s32.totalorder %s2748_s23, 1 }
  0x11   : > { %p3936_p4 = por %p4745_p1, %p46_p0  ;;  %p2749_p7 = scmp.ge.s32.totalorder %s3854_s21, 1 }
  0x12   : > { %p3942_p6 = por %p72_p2, %p4745_p1  ;;  %p3947_p8 = por %p144_p5, %p72_p2 }
  0x13   : > { %s4758_s24 = scalar_select %p3936_p4, 1, 0 }
  0x14   : > { %s4759_s25 = scalar_select %p3942_p6, 1, 0 }
  0x15   : > { %s4760_s26 = scalar_select %p3947_p8, 1, 0 }
  0x16   : > { %p151_p9 = scmp.lt.s32.totalorder %s3854_s21, 3  ;;  %s3856_s28 = smov [#allocation7]  }
  0x17   : > { %s163_s29 = sshll.u32 %s3856_s28, 4  ;;  %s3857_s5 = smov [#allocation8]   ;;  %s3956_s29 = int_to_ptr.vmem [resolvable:$true] %s163_s29 }
  0x18   : > { %p3952_p10 = pnand %p2749_p7, %p151_p9  ;;  %s176_s6 = sshll.u32 %s3857_s5, 4  ;;  %s3967_s6 = int_to_ptr.vmem [resolvable:$true] %s176_s6 }
  0x19   : > { %s4763_s2 = sld [smem:[#allocation17_spill]] }
  0x1a   : > { %p3404_p11 = pneg %p3952_p10 }
  0x1c   : > { %p3963_p13 = pnand %p3404_p11, %p4745_p1 }
  0x1e   : > { %p3638_p2 = pneg %p3963_p13 }
  0x1f   : > { %s3636_s9 = scalar_lea.hbm %s4763_s2, 8192 }
  0x20   : > { %p3637_p0 = scmp.ne.s32.totalorder %s4763_s2, %s3636_s9  ;;  %p3643_p9 = scmp.lt.u32.totalorder %s3636_s9, %s4763_s2 }
  0x22   : > { %p3639_p5 = pnand %p3638_p2, %p3637_p0 }
  0x24   : > { %p3640_p7 = pneg %p3639_p5 }
  0x26   : > { %p3645_p11 = pnand %p3643_p9, %p3640_p7 }
  0x28   : > { %3648 = shalt.err (!%p3645_p11)
}
  0x29   : > { %s3649_s14 = scalar_lea.vmem %s3956_s29, 8192  ;;  %p3657_p8 = scmp.lt.s32.totalorder %s3956_s29, %s3956_s29 }
  0x2a   : > { %p3650_p12 = scmp.ne.s32.totalorder %s3956_s29, %s3649_s14  ;;  %p3658_p0 = scmp.lt.s32.totalorder %s3649_s14, %s3649_s14 }
  0x2c   : > { %p3652_p1 = pnand %p3650_p12, %p3638_p2  ;;  %p3659_p5 = por %p3658_p0, %p3657_p8 }
  0x2e   : > { %p3653_p3 = pneg %p3652_p1 }
  0x30   : > { %p3660_p6 = pnand %p3659_p5, %p3653_p3 }
  0x32   : > { %3663 = shalt.err (!%p3660_p6)
}
  0x33   : > { %s4750_s18 = smov 64   ;;  %s3859_s23 = smov 4  }
  0x34   : > { %3407 = dma.hbm_to_vmem [thread:$0]  (!%p3963_p13), %s4763_s2, 8192, %s3956_s29, [#allocation6], %s4750_s18, %s4750_s18, %s3859_s23  }
  0x35   : > { %s4764_s3 = sld [smem:[#allocation18_spill]] }
  0x3b   : > { %s3664_s9 = scalar_lea.hbm %s4764_s3, 22528 }
  0x3c   : > { %p3665_p1 = scmp.ne.s32.totalorder %s4764_s3, %s3664_s9  ;;  %p3671_p8 = scmp.lt.u32.totalorder %s3664_s9, %s4764_s3 }
  0x3e   : > { %p3667_p3 = pnand %p3665_p1, %p3638_p2 }
  0x40   : > { %p3668_p6 = pneg %p3667_p3 }
  0x42   : > { %p3673_p12 = pnand %p3671_p8, %p3668_p6 }
  0x44   : > { %3676 = shalt.err (!%p3673_p12)
}
  0x45   : > { %s3677_s29 = scalar_lea.vmem %s3967_s6, 22528  ;;  %p3685_p0 = scmp.lt.s32.totalorder %s3967_s6, %s3967_s6 }
  0x46   : > { %p3678_p7 = scmp.ne.s32.totalorder %s3967_s6, %s3677_s29  ;;  %p3686_p5 = scmp.lt.s32.totalorder %s3677_s29, %s3677_s29 }
  0x48   : > { %p3680_p9 = pnand %p3678_p7, %p3638_p2  ;;  %p3687_p1 = por %p3686_p5, %p3685_p0 }
  0x4a   : > { %p3681_p11 = pneg %p3680_p9 }
  0x4c   : > { %p3688_p3 = pnand %p3687_p1, %p3681_p11 }
  0x4e   : > { %3691 = shalt.err (!%p3688_p3)
}
  0x4f   : > { %s4748_s14 = smov 128   ;;  %s4747_s28 = smov 8  }
  0x50   : > { %3410 = dma.hbm_to_vmem [thread:$0]  (!%p3963_p13), %s4764_s3, 22528, %s3967_s6, [#allocation9], %s4748_s14, %s4748_s14, %s4747_s28  }
  0x51   : > { %s4028_s8 = sadd.s32 1, %s3854_s21   ;;  %s33_s11 = sadd.s32 1, %s3850_s20 }
  0x52   : > { %s4032_s9 = ssub.s32 %s3854_s21, %s4028_s8  ;;  %p40_p6 = scmp.ne.s32.totalorder %s3850_s20, %s3846_s19 }
  0x53   : > { %s30_s10 = sor.u32 %s4032_s9, %s4032_s9  ;;  %p4752_p8 = scmp.eq.s32.totalorder %s3854_s21, 0 }
  0x54   : > { %p31_p2 = scmp.eq.s32.totalorder %s30_s10, 0  ;;  %p4751_p12 = scmp.lt.s32.totalorder %s3854_s21, 2 }
  0x55   : > { %p42_p7 = por %p4752_p8, %p40_p6  ;;  %s190_s6 = sand.u32 1, %s3850_s20  }
  0x56   : > { %s4042_s30 = scalar_select %p31_p2, %s3850_s20, %s33_s11  }
  0x57   : > { %s2753_s12 = sshll.u32 %s190_s6, 6  ;;  %s2843_s13 = sshll.u32 %s3854_s21, 5 }
  0x58   : > { %s200_s29 = sadd.s32 %s3854_s21, %s2843_s13  ;;  %s194_s5 = scalar_lea.vmem [#allocation2], %s2753_s12 }
  0x59   : > { %s203_s7 = sshll.u32 %s194_s5, 4  ;;  %s2756_s28 = sshll.u32 %s200_s29, 6  ;;  %s4049_s7 = int_to_ptr.vmem [resolvable:$true] %s203_s7 }
  0x5a   : > { %s4765_s0 = sld [smem:[#allocation16_spill]]  ;;  %p4058_p13 = pnand %p4751_p12, %p42_p7 }
  0x5b   : > { %s4063_s12 = scalar_lea.sflag [#allocation3], %s190_s6 }
  0x5c   : > { %p3694_p0 = pneg %p4058_p13 }
  0x60   : > { %s4054_s10 = scalar_lea.hbm %s4765_s0, %s2756_s28  ;;  %s3697_s28 = scalar_lea.hbm %s4765_s0, 4096 }
  0x61   : > { %s3692_s13 = scalar_lea.hbm %s4054_s10, 1024  ;;  %p3698_p3 = scmp.lt.u32.totalorder %s4054_s10, %s4765_s0 }
  0x62   : > { %p3693_p11 = scmp.ne.s32.totalorder %s4054_s10, %s3692_s13  ;;  %p3699_p2 = scmp.lt.u32.totalorder %s3697_s28, %s3692_s13 }
  0x63   : > { %p3701_p7 = scmp.lt.u32.totalorder %s3692_s13, %s4054_s10 }
  0x64   : > { %p3695_p5 = pnand %p3694_p0, %p3693_p11  ;;  %p3700_p6 = por %p3699_p2, %p3698_p3 }
  0x66   : > { %p3696_p1 = pneg %p3695_p5  ;;  %p3702_p12 = por %p3701_p7, %p3700_p6 }
  0x68   : > { %p3703_p8 = pnand %p3702_p12, %p3696_p1 }
  0x6a   : > { %3706 = shalt.err (!%p3703_p8)
}
  0x6b   : > { %s3707_s6 = scalar_lea.vmem %s4049_s7, 1024  ;;  %s3862_s18 = smov [#allocation2]  }
  0x6c   : > { %p3708_p11 = scmp.ne.s32.totalorder %s4049_s7, %s3707_s6  ;;  %s3712_s14 = sshll.u32 %s3862_s18, 4  ;;  %s3713_s14 = int_to_ptr.vmem [resolvable:$false] %s3712_s14 }
  0x6d   : > { %s3714_s29 = scalar_lea.vmem %s3713_s14, 2048  ;;  %p3715_p4 = scmp.lt.s32.totalorder %s4049_s7, %s3713_s14 }
  0x6e   : > { %p3710_p5 = pnand %p3708_p11, %p3694_p0  ;;  %p3716_p3 = scmp.lt.s32.totalorder %s3714_s29, %s3707_s6 }
  0x70   : > { %p3711_p9 = pneg %p3710_p5  ;;  %p3717_p2 = por %p3716_p3, %p3715_p4 }
  0x72   : > { %p3718_p6 = pnand %p3717_p2, %p3711_p9 }
  0x74   : > { %3721 = shalt.err (!%p3718_p6)
}
  0x75   : > { %s4767_s13 = smov 64   ;;  %s4768_s28 = smov 128  }
  0x76   : > { %3414 = dma.hbm_to_vmem [thread:$0]  (!%p4058_p13), %s4054_s10, 1024, %s4049_s7, %s4063_s12, %s4768_s28, %s4767_s13, %s3859_s23  }
  0x77   : > { %s59_s5 = sadd.s32 1, %s3838_s17  ;;  %p66_p4 = scmp.ne.s32.totalorder %s3838_s17, %s3834_s16 }
  0x78   : > { %p4769_p8 = scmp.eq.s32.totalorder %s4032_s9, 0  ;;  %p4770_p12 = scmp.eq.s32.totalorder %s3854_s21, 0 }
  0x79   : > { %p4771_p0 = scmp.eq.s32.totalorder %s3926_s22, 1  ;;  %s213_s18 = sand.u32 1, %s3854_s21  }
  0x7a   : > { %s4100_s11 = scalar_select %p4769_p8, %s3838_s17, %s59_s5  }
  0x7b   : > { %p68_p9 = por %p66_p4, %p4770_p12  ;;  %p4106_p1 = por %p4771_p0, %p66_p4 }
  0x7c   : > { %s215_s14 = sand.u32 1, %s3838_s17   ;;  %s2844_s0 = sshll.u32 %s3854_s21, 11 }
  0x7d   : > { %s4772_s6 = scalar_select %p4106_p1, 1, 0 }
  0x7e   : > { %s2757_s29 = sshll.u32 %s215_s14, 7  ;;  %s4116_s23 = scalar_lea.hbm %s4741_s1, %s2844_s0 }
  0x7f   : > { %s217_s9 = scalar_lea.vmem [#allocation5], %s2757_s29  ;;  %p4773_p13 = scmp.lt.s32.totalorder %s3854_s21, 2 }
  0x80   : > { %s224_s7 = sshll.u32 %s217_s9, 4  ;;  %s4126_s12 = scalar_lea.sflag [#allocation6], %s213_s18  ;;  %s4118_s7 = int_to_ptr.vmem [resolvable:$true] %s224_s7 }
  0x81   : > { %p4122_p7 = pnand %p4773_p13, %p68_p9  ;;  %s3722_s2 = scalar_lea.hbm %s4116_s23, 2048 }
  0x82   : > { %p3723_p11 = scmp.ne.s32.totalorder %s4116_s23, %s3722_s2  ;;  %s3727_s13 = scalar_lea.hbm %s4741_s1, 4096 }
  0x83   : > { %p3724_p5 = pneg %p4122_p7  ;;  %p3728_p6 = scmp.lt.u32.totalorder %s4116_s23, %s4741_s1 }
  0x84   : > { %p3729_p4 = scmp.lt.u32.totalorder %s3727_s13, %s3722_s2  ;;  %p3731_p12 = scmp.lt.u32.totalorder %s3722_s2, %s4116_s23 }
  0x85   : > { %p3725_p3 = pnand %p3724_p5, %p3723_p11 }
  0x86   : > { %p3730_p8 = por %p3729_p4, %p3728_p6 }
  0x87   : > { %p3726_p2 = pneg %p3725_p3 }
  0x88   : > { %p3732_p9 = por %p3731_p12, %p3730_p8 }
  0x8a   : > { %p3733_p0 = pnand %p3732_p9, %p3726_p2 }
  0x8c   : > { %3736 = shalt.err (!%p3733_p0)
}
  0x8d   : > { %s3737_s18 = scalar_lea.vmem %s4118_s7, 2048  ;;  %s3863_s29 = smov [#allocation5]  }
  0x8e   : > { %p3738_p13 = scmp.ne.s32.totalorder %s4118_s7, %s3737_s18  ;;  %s3742_s9 = sshll.u32 %s3863_s29, 4  ;;  %s3743_s9 = int_to_ptr.vmem [resolvable:$false] %s3742_s9 }
  0x8f   : > { %s3744_s0 = scalar_lea.vmem %s3743_s9, 4096  ;;  %p3745_p1 = scmp.lt.s32.totalorder %s4118_s7, %s3743_s9 }
  0x90   : > { %p3740_p11 = pnand %p3738_p13, %p3724_p5  ;;  %p3746_p6 = scmp.lt.s32.totalorder %s3744_s0, %s3737_s18 }
  0x92   : > { %p3741_p3 = pneg %p3740_p11  ;;  %p3747_p4 = por %p3746_p6, %p3745_p1 }
  0x94   : > { %p3748_p8 = pnand %p3747_p4, %p3741_p3 }
  0x96   : > { %3751 = shalt.err (!%p3748_p8)
}
  0x97   : > { %s4775_s2 = smov 8   ;;  %236 = sbr.rel (%p3952_p10) target bundleno = 3057 (0xbf1), region = 36 }
  0x98   : > { %3417 = dma.hbm_to_vmem [thread:$0]  (!%p4122_p7), %s4116_s23, 2048, %s4118_s7, %s4126_s12, %s4768_s28, %s4768_s28, %s4775_s2  }
  0x99   : > { %s238_s3 = sand.u32 (!%p3952_p10), 1, %s3846_s19   ;;  %p4776_p1 = scmp.ne.s32.totalorder (!%p3952_p10), %s4758_s24, 0 }
  0x9a   : > { %s2761_s13 = sshll.u32 (!%p3952_p10), %s238_s3, 6  ;;  %s239_s5 = scalar_lea.sflag (!%p3952_p10), [#allocation3], %s238_s3 }
  0x9b   : > { %s4160_s14 = scalar_lea.vmem (!%p3952_p10), [#allocation2], %s2761_s13 }
  0x9e   : > { %3809 = dma.done.wait (%p4776_p1), %s239_s5, 1024  }
  0x9f   : > { %3811 = vsyncadd (%p4776_p1), %s239_s5, 4294966272  ;;  %s247_s28 = sand.u32 1, %s3926_s22   ;;  %s249_s23 = sand.u32 1, %s3834_s16  }
  0xa0   : > { %s4170_s27 = sshll.u32 %s249_s23, 7  ;;  %s248_s7 = scalar_lea.sflag [#allocation6], %s247_s28 }
  0xa1   : > { %s4173_s10 = scalar_lea.vmem [#allocation5], %s4170_s27  ;;  %p4777_p10 = scmp.ne.s32.totalorder %s4759_s25, 0 }
  0xa3   : > { %3813 = dma.done.wait (%p4777_p10), %s248_s7, 2048  }
  0xa4   : > { %3815 = vsyncadd (%p4777_p10), %s248_s7, 4294965248  ;;  %p4778_p7 = scmp.eq.s32.totalorder %s3926_s22, 0 }
  0xa6   : > { %3817 = dma.done.wait (%p4778_p7), [#allocation6], 8192   ;;  %p4779_p5 = pmov %p4778_p7 }
  0xa8   : > { %3819 = vsyncadd (%p4779_p5), [#allocation6], 4294959104  ;;  %p4780_p2 = pmov %p4779_p5 }
  0xaa   : > { %3821 = dma.done.wait (%p4780_p2), [#allocation9], 22528   ;;  %p4781_p12 = pmov %p4780_p2 }
  0xab   : > { %v4188_v0 = vld [vmem:[%s4173_s10] sm:$0xff]  ;;  %v4191_v1 = vld [vmem:[%s4173_s10 + $0x8] sm:$0xff]  ;;  %v4194_v2 = vld [vmem:[%s4173_s10 + $0x10] sm:$0xff]  ;;  %s4645_s24 = scalar_lea.vmem [#allocation10], %s4170_s27  ;;  %s2845_s25 = sshll.u32 %s3926_s22, 11 }
  0xac   : > { %3823 = vsyncadd (%p4781_p12), [#allocation9], 4294944768  ;;  %v325_v3 = vpack.c.bf16 %v4191_v1, %v4188_v0  ;;  %v4199_v4 = vld [vmem:[%s4173_s10 + $0x18] sm:$0xff]  ;;  %v4204_v6 = vld [vmem:[%s4173_s10 + $0x20] sm:$0xff]  ;;  %s2631_s12 = sshll.u32 %s4645_s24, 4  ;;  %s4681_s9 = scalar_lea.hbm %s4744_s4, %s2845_s25  ;;  %s4683_s12 = int_to_ptr.vmem [resolvable:$true] %s2631_s12 }
  0xad   : > { %v326_v5 = vpack.c.bf16 %v4199_v4, %v4194_v2  ;;  %v4207_v7 = vld [vmem:[%s4173_s10 + $0x28] sm:$0xff]  ;;  %v4210_v8 = vld [vmem:[%s4173_s10 + $0x30] sm:$0xff]  ;;  %v4215_v10 = vld [vmem:[%s4173_s10 + $0x38] sm:$0xff]  ;;  %s4689_s22 = scalar_lea.sflag [#allocation4], %s249_s23  ;;  %s3752_s0 = scalar_lea.vmem %s4683_s12, 2048 }
  0xae   : > { %3022 = vmatprep.subr.bf16.mxu0 %v325_v3  ;;  %v327_v9 = vpack.c.bf16 %v4207_v7, %v4204_v6  ;;  %v4218_v11 = vld [vmem:[%s4160_s14] sm:$0xff]   ;;  %v328_v12 = vpack.c.bf16 %v4215_v10, %v4210_v8  ;;  %v4227_v14 = vld [vmem:[%s4173_s10 + $0x48] sm:$0xff]  ;;  %v4230_v15 = vld [vmem:[%s4173_s10 + $0x50] sm:$0xff]  ;;  %p3753_p9 = scmp.ne.s32.totalorder %s4683_s12, %s3752_s0  ;;  %p4782_p0 = scmp.ne.s32.totalorder %s4772_s6, 0 }
  0xaf   : > { %3023 = vmatpush3.bf16.msra.mxu0 %v325_v3  ;;  %3038 = vmatprep.mubr.bf16.mxu0 %v4218_v11  ;;  %v4224_v13 = vld [vmem:[%s4173_s10 + $0x40] sm:$0xff]  ;;  %v4235_v17 = vld [vmem:[%s4173_s10 + $0x58] sm:$0xff]  ;;  %v3501_v19 = vld [vmem:[#allocation7 + $0x8] sm:$0xff]   ;;  %s3864_s2 = smov [#allocation10]  }
  0xb0   : > { %3024 = vmatprep.subr.bf16.mxu0 %v326_v5  ;;  %v329_v16 = vpack.c.bf16 %v4227_v14, %v4224_v13  ;;  %v3500_v18 = vld [vmem:[#allocation7] sm:$0xff]   ;;  %v330_v21 = vpack.c.bf16 %v4235_v17, %v4230_v15  ;;  %v4243_v22 = vld [vmem:[%s4173_s10 + $0x68] sm:$0xff]  ;;  %v3502_v23 = vld [vmem:[#allocation7 + $0x10] sm:$0xff]   ;;  %p3754_p13 = pnand %p3753_p9, %p4782_p0  ;;  %s3756_s3 = sshll.u32 %s3864_s2, 4  ;;  %s3757_s3 = int_to_ptr.vmem [resolvable:$false] %s3756_s3 }
  0xb1   : > { %v4238_v20 = vld [vmem:[%s4173_s10 + $0x60] sm:$0xff]  ;;  %3054 = vmatprep.subr.bf16.mxu1 %v3500_v18  ;;  %v4246_v24 = vld [vmem:[%s4173_s10 + $0x70] sm:$0xff]  ;;  %v4249_v25 = vld [vmem:[%s4173_s10 + $0x78] sm:$0xff]  ;;  %s3758_s13 = scalar_lea.vmem %s3757_s3, 4096  ;;  %p3759_p3 = scmp.lt.s32.totalorder %s4683_s12, %s3757_s3 }
  0xb2   : > { %3055 = vmatpush3.bf16.msra.mxu1 %v3500_v18  ;;  %v3503_v26 = vld [vmem:[#allocation7 + $0x18] sm:$0xff]   ;;  %v331_v27 = vpack.c.bf16 %v4243_v22, %v4238_v20  ;;  %v3504_v28 = vld [vmem:[#allocation7 + $0x20] sm:$0xff]   ;;  %v332_v29 = vpack.c.bf16 %v4249_v25, %v4246_v24  ;;  %v3505_v30 = vld [vmem:[#allocation7 + $0x28] sm:$0xff]   ;;  %p3755_p11 = pneg %p3754_p13  ;;  %p3760_p6 = scmp.lt.s32.totalorder %s3758_s13, %s3752_s0 }
  0xb3   : > { %3025 = vmatpush3.bf16.msra.mxu0 %v326_v5  ;;  %3056 = vmatprep.subr.bf16.mxu1 %v3501_v19  ;;  %v4256_v31 = vld [vmem:[%s4160_s14 + $0x8] sm:$0xff]   ;;  %v4259_v32 = vld [vmem:[%s4160_s14 + $0x10] sm:$0xff]   ;;  %v4264_v33 = vld [vmem:[%s4160_s14 + $0x18] sm:$0xff]  }
  0xb4   : > { %3026 = vmatprep.subr.bf16.mxu0 %v327_v9  ;;  %v4267_v34 = vld [vmem:[%s4160_s14 + $0x20] sm:$0xff]   ;;  %v4272_v35 = vld [vmem:[%s4160_s14 + $0x28] sm:$0xff]   ;;  %v4275_v36 = vld [vmem:[%s4160_s14 + $0x30] sm:$0xff]   ;;  %p3761_p4 = por %p3760_p6, %p3759_p3 }
  0xb5   : > { %v4280_v37 = vld [vmem:[%s4160_s14 + $0x38] sm:$0xff]   ;;  %v3506_v38 = vld [vmem:[#allocation7 + $0x30] sm:$0xff]   ;;  %v3508_v40 = vld [vmem:[#allocation7 + $0x40] sm:$0xff]  }
  0xb6   : > { %3057 = vmatpush3.bf16.msra.mxu1 %v3501_v19  ;;  %v3507_v39 = vld [vmem:[#allocation7 + $0x38] sm:$0xff]   ;;  %v3509_v41 = vld [vmem:[#allocation7 + $0x48] sm:$0xff]   ;;  %v3510_v42 = vld [vmem:[#allocation7 + $0x50] sm:$0xff]   ;;  %p3762_p8 = pnand %p3761_p4, %p3755_p11 }
  0xb7   : > { %3027 = vmatpush3.bf16.msra.mxu0 %v327_v9  ;;  %3058 = vmatprep.subr.bf16.mxu1 %v3502_v23  ;;  %v3511_v43 = vld [vmem:[#allocation7 + $0x58] sm:$0xff]   ;;  %v3512_v44 = vld [vmem:[#allocation7 + $0x60] sm:$0xff]   ;;  %v3513_v45 = vld [vmem:[#allocation7 + $0x68] sm:$0xff]  }
  0xb8   : > { %3028 = vmatprep.subr.bf16.mxu0 %v328_v12  ;;  %v480_v46 = vld [vmem:[#allocation8 + $0x10] sm:$0xff]  ;;  %v481_v47 = vld [vmem:[#allocation8 + $0x18] sm:$0xff]  ;;  %v478_v48 = vld [vmem:[#allocation8] sm:$0xff] }
  0xb9   : > { %v479_v49 = vld [vmem:[#allocation8 + $0x8] sm:$0xff]  ;;  %v496_v50 = vmul.f32 %v480_v46, %v4194_v2  ;;  %v497_v51 = vmul.f32 %v481_v47, %v4199_v4  ;;  %v494_v53 = vmul.f32 %v478_v48, %v4188_v0  ;;  %v484_v62 = vld [vmem:[#allocation8 + $0x30] sm:$0xff]  ;;  %v485_v63 = vld [vmem:[#allocation8 + $0x38] sm:$0xff] }
  0xba   : > { %3059 = vmatpush3.bf16.msra.mxu1 %v3502_v23  ;;  %v495_v54 = vmul.f32 %v479_v49, %v4191_v1  ;;  %v482_v5 = vld [vmem:[#allocation8 + $0x20] sm:$0xff]  ;;  %v483_v9 = vld [vmem:[#allocation8 + $0x28] sm:$0xff]  ;;  %v500_v4 = vmul.f32 %v484_v62, %v4210_v8 }
  0xbb   : > { %3029 = vmatpush3.bf16.msra.mxu0 %v328_v12  ;;  %3060 = vmatprep.subr.bf16.mxu1 %v3503_v26  ;;  %v501_v12 = vmul.f32 %v485_v63, %v4215_v10  ;;  %v498_v1 = vmul.f32 %v482_v5, %v4204_v6  ;;  %v486_v8 = vld [vmem:[#allocation8 + $0x40] sm:$0xff] }
  0xbc   : > { %3030 = vmatprep.subr.bf16.mxu0 %v329_v16 }
  0xbe   : > { %3061 = vmatpush3.bf16.msra.mxu1 %v3503_v26 }
  0xbf   : > { %3031 = vmatpush3.bf16.msra.mxu0 %v329_v16  ;;  %3062 = vmatprep.subr.bf16.mxu1 %v3504_v28  ;;  %v499_v16 = vmul.f32 %v483_v9, %v4207_v7  ;;  %v502_v7 = vmul.f32 %v486_v8, %v4224_v13 }
  0xc0   : > { %3032 = vmatprep.subr.bf16.mxu0 %v330_v21 }
  0xc2   : > { %3063 = vmatpush3.bf16.msra.mxu1 %v3504_v28 }
  0xc3   : > { %3033 = vmatpush3.bf16.msra.mxu0 %v330_v21  ;;  %3064 = vmatprep.subr.bf16.mxu1 %v3505_v30 }
  0xc4   : > { %3034 = vmatprep.subr.bf16.mxu0 %v331_v27 }
  0xc6   : > { %3065 = vmatpush3.bf16.msra.mxu1 %v3505_v30  ;;  %v489_v30 = vld [vmem:[#allocation8 + $0x58] sm:$0xff] }
  0xc7   : > { %3035 = vmatpush3.bf16.msra.mxu0 %v331_v27  ;;  %3066 = vmatprep.subr.bf16.mxu1 %v3506_v38  ;;  %v505_v6 = vmul.f32 %v489_v30, %v4235_v17  ;;  %v555_v30 = vld [vmem:[#allocation8 + $0x1a0] sm:$0xff] }
  0xc8   : > { %3036 = vmatprep.subr.bf16.mxu0 %v332_v29 }
  0xca   : > { %3067 = vmatpush3.bf16.msra.mxu1 %v3506_v38 }
  0xcb   : > { %3037 = vmatpush3.bf16.msra.mxu0 %v332_v29  ;;  %3068 = vmatprep.subr.bf16.mxu1 %v3507_v39  ;;  %v488_v29 = vld [vmem:[#allocation8 + $0x50] sm:$0xff] }
  0xcc   : > { %3086 = vmatprep.subr.bf16.mxu0 %v3508_v40 }
  0xce   : > { %3039 = vmatmul.mubr.bf16.vlgmr.msra.gmra.mrb[0].mxu0 %v4256_v31  ;;  %3069 = vmatpush3.bf16.msra.mxu1 %v3507_v39  ;;  %v487_v39 = vld [vmem:[#allocation8 + $0x48] sm:$0xff] }
  0xcf   : > { %3042 = vmatprep.mubr.bf16.mxu0 %v4259_v32  ;;  %3087 = vmatpush3.bf16.msra.mxu0 %v3508_v40  ;;  %v504_v40 = vmul.f32 %v488_v29, %v4230_v15  ;;  %v490_v15 = vld [vmem:[#allocation8 + $0x60] sm:$0xff] }
  0xd0   : > { %3088 = vmatprep.subr.bf16.mxu0 %v3509_v41 }
  0xd3   : > { %3089 = vmatpush3.bf16.msra.mxu0 %v3509_v41 }
  0xd4   : > { %3090 = vmatprep.subr.bf16.mxu0 %v3510_v42 }
  0xd6   : > { %3043 = vmatmul.mubr.bf16.gmra.mrb[4].mxu0 %v4264_v33 }
  0xd7   : > { %3046 = vmatprep.mubr.bf16.mxu0 %v4267_v34  ;;  %3091 = vmatpush3.bf16.msra.mxu0 %v3510_v42  ;;  %v503_v42 = vmul.f32 %v487_v39, %v4227_v14  ;;  %v506_v14 = vmul.f32 %v490_v15, %v4238_v20  ;;  %v3515_v20 = vld [vmem:[#allocation7 + $0x78] sm:$0xff]  }
  0xd8   : > { %3092 = vmatprep.subr.bf16.mxu0 %v3511_v43  ;;  %v558_v39 = vld [vmem:[#allocation8 + $0x1b8] sm:$0xff] }
  0xdb   : > { %3093 = vmatpush3.bf16.msra.mxu0 %v3511_v43 }
  0xdc   : > { %3094 = vmatprep.subr.bf16.mxu0 %v3512_v44 }
  0xde   : > { %3047 = vmatmul.mubr.bf16.gmra.mrb[8].mxu0 %v4272_v35 }
  0xdf   : > { %3050 = vmatprep.mubr.bf16.mxu0 %v4275_v36  ;;  %3095 = vmatpush3.bf16.msra.mxu0 %v3512_v44 }
  0xe0   : > { %3096 = vmatprep.subr.bf16.mxu0 %v3513_v45 }
  0xe3   : > { %3097 = vmatpush3.bf16.msra.mxu0 %v3513_v45 }
  0xe6   : > { %3051 = vmatmul.mubr.bf16.gmra.mrb[12].mxu0 %v4280_v37 }
 0x1a1   : > { %v3040_v52 = vpop.f32.mrb[0].mxu0 }
 0x1a2   : > { %v415_v55 = vpop.f32.mrb[1].mxu0  ;;  %v512_v57 = vadd.f32 %v3040_v52, %v496_v50  ;;  %v492_v50 = vld [vmem:[#allocation8 + $0x70] sm:$0xff] }
 0x1a3   : > { %v3041_v56 = vpop.f32.mrb[2].mxu0  ;;  %v510_v60 = vadd.f32 %v494_v53, %v415_v55  ;;  %v491_v53 = vld [vmem:[#allocation8 + $0x68] sm:$0xff] }
 0x1a4   : > { %v513_v58 = vadd.f32 %v3041_v56, %v497_v51  ;;  %v418_v59 = vpop.f32.mrb[3].mxu0  ;;  %v493_v51 = vld [vmem:[#allocation8 + $0x78] sm:$0xff]  ;;  %v507_v56 = vmul.f32 %v491_v53, %v4243_v22  ;;  %v553_v22 = vld [vmem:[#allocation8 + $0x190] sm:$0xff] }
 0x1a5   : > { %v511_v61 = vadd.f32 %v495_v54, %v418_v59  ;;  %v508_v54 = vmul.f32 %v492_v50, %v4246_v24  ;;  %v509_v13 = vmul.f32 %v493_v51, %v4249_v25  ;;  %v3514_v24 = vld [vmem:[#allocation7 + $0x70] sm:$0xff]   ;;  %v551_v25 = vld [vmem:[#allocation8 + $0x180] sm:$0xff]  ;;  %v562_v53 = vld [vmem:[#allocation8 + $0x1d8] sm:$0xff] }
 0x1a6   : > { %v527_v3 = vpack.c.bf16 %v513_v58, %v512_v57  ;;  %3098 = vmatprep.subr.bf16.mxu0 %v3514_v24  ;;  %v559_v51 = vld [vmem:[#allocation8 + $0x1c0] sm:$0xff] }
 0x1a7   : > { %v526_v2 = vpack.c.bf16 %v511_v61, %v510_v60  ;;  %3099 = vmatpush3.bf16.msra.mxu0 %v3514_v24 }
 0x1a8   : > { %3100 = vmatprep.subr.bf16.mxu0 %v3515_v20 }
 0x1a9   : > { %v3044_v0 = vpop.f32.mrb[4].mxu0  ;;  %3070 = vmatprep.mubr.bf16.mxu1 %v526_v2  ;;  %v554_v2 = vld [vmem:[#allocation8 + $0x198] sm:$0xff] }
 0x1aa   : > { %v431_v18 = vpop.f32.mrb[5].mxu0  ;;  %3071 = vmatmul.mubr.bf16.vlgmr.msra.gmra.mrb[0].mxu1 %v527_v3  ;;  %v516_v21 = vadd.f32 %v3044_v0, %v500_v4  ;;  %v552_v0 = vld [vmem:[#allocation8 + $0x188] sm:$0xff] }
 0x1ab   : > { %v3045_v19 = vpop.f32.mrb[6].mxu0  ;;  %v514_v27 = vadd.f32 %v498_v1, %v431_v18  ;;  %3101 = vmatpush3.bf16.msra.mxu0 %v3515_v20 }
 0x1ac   : > { %v517_v23 = vadd.f32 %v3045_v19, %v501_v12  ;;  %v434_v26 = vpop.f32.mrb[7].mxu0 }
 0x1ad   : > { %v515_v28 = vadd.f32 %v499_v16, %v434_v26 }
 0x1ae   : > { %v529_v38 = vpack.c.bf16 %v517_v23, %v516_v21 }
 0x1af   : > { %v528_v10 = vpack.c.bf16 %v515_v28, %v514_v27  ;;  %v557_v28 = vld [vmem:[#allocation8 + $0x1b0] sm:$0xff] }
 0x1b1   : > { %v3048_v41 = vpop.f32.mrb[8].mxu0  ;;  %3074 = vmatprep.mubr.bf16.mxu1 %v528_v10 }
 0x1b2   : > { %v447_v43 = vpop.f32.mrb[9].mxu0  ;;  %3075 = vmatmul.mubr.bf16.gmra.mrb[4].mxu1 %v529_v38  ;;  %v520_v45 = vadd.f32 %v3048_v41, %v504_v40 }
 0x1b3   : > { %v3049_v44 = vpop.f32.mrb[10].mxu0  ;;  %v518_v48 = vadd.f32 %v502_v7, %v447_v43 }
 0x1b4   : > { %v521_v46 = vadd.f32 %v3049_v44, %v505_v6  ;;  %v450_v47 = vpop.f32.mrb[11].mxu0  ;;  %v556_v6 = vld [vmem:[#allocation8 + $0x1a8] sm:$0xff] }
 0x1b5   : > { %v519_v49 = vadd.f32 %v503_v42, %v450_v47 }
 0x1b6   : > { %v531_v52 = vpack.c.bf16 %v521_v46, %v520_v45 }
 0x1b7   : > { %v530_v17 = vpack.c.bf16 %v519_v49, %v518_v48  ;;  %v561_v49 = vld [vmem:[#allocation8 + $0x1d0] sm:$0xff] }
 0x1b9   : > { %v3052_v55 = vpop.f32.mrb[12].mxu0  ;;  %3078 = vmatprep.mubr.bf16.mxu1 %v530_v17 }
 0x1ba   : > { %v463_v57 = vpop.f32.mrb[13].mxu0  ;;  %3079 = vmatmul.mubr.bf16.gmra.mrb[8].mxu1 %v531_v52  ;;  %v524_v59 = vadd.f32 %v3052_v55, %v508_v54 }
 0x1bb   : > { %v3053_v58 = vpop.f32.mrb[14].mxu0  ;;  %v522_v62 = vadd.f32 %v506_v14, %v463_v57 }
 0x1bc   : > { %v525_v60 = vadd.f32 %v3053_v58, %v509_v13  ;;  %v466_v61 = vpop.f32.mrb[15].mxu0  ;;  %v560_v13 = vld [vmem:[#allocation8 + $0x1c8] sm:$0xff] }
 0x1bd   : > { %v523_v63 = vadd.f32 %v507_v56, %v466_v61 }
 0x1be   : > { %v533_v3 = vpack.c.bf16 %v525_v60, %v524_v59 }
 0x1bf   : > { %v532_v5 = vpack.c.bf16 %v523_v63, %v522_v62  ;;  %v565_v63 = vld [vmem:[#allocation8 + $0x1f0] sm:$0xff] }
 0x1c1   : > { %3082 = vmatprep.mubr.bf16.mxu1 %v532_v5  ;;  %v563_v5 = vld [vmem:[#allocation8 + $0x1e0] sm:$0xff] }
 0x1c2   : > { %3083 = vmatmul.mubr.bf16.gmra.mrb[12].mxu1 %v533_v3 }
 0x1c3   : > { %3134 = vmatprep.mubr.bf16.mxu1 %v4218_v11 }
 0x27d   : > { %v3072_v9 = vpop.f32.mrb[0].mxu1 }
 0x27e   : > { %v658_v4 = vadd.f32 %v3072_v9, %v553_v22  ;;  %v649_v12 = vpop.f32.mrb[1].mxu1  ;;  %v566_v22 = vld [vmem:[#allocation8 + $0x1f8] sm:$0xff] }
 0x27f   : > { %v650_v1 = vadd.f32 %v649_v12, %v551_v25  ;;  %v3073_v16 = vpop.f32.mrb[2].mxu1 }
 0x280   : > { %v661_v18 = vadd.f32 %v3073_v16, %v554_v2  ;;  %v652_v19 = vpop.f32.mrb[3].mxu1  ;;  %v714_v23 = vmax.f32 %v658_v4, 0.0  ;;  %v564_v2 = vld [vmem:[#allocation8 + $0x1e8] sm:$0xff] }
 0x281   : > { %v653_v21 = vadd.f32 %v652_v19, %v552_v0  ;;  %v712_v26 = vmax.f32 %v650_v1, 0.0 }
 0x282   : > { %v715_v11 = vmax.f32 %v661_v18, 0.0 }
 0x283   : > { %v713_v27 = vmax.f32 %v653_v21, 0.0 }
 0x284   : > { %v729_v29 = vpack.c.bf16 %v715_v11, %v714_v23 }
 0x285   : > { %v728_v38 = vpack.c.bf16 %v713_v27, %v712_v26  ;;  %v3076_v8 = vpop.f32.mrb[4].mxu1  ;;  %v3516_v27 = vld [vmem:[#allocation7 + $0x80] sm:$0xff]  }
 0x286   : > { %v674_v10 = vadd.f32 %v3076_v8, %v557_v28  ;;  %v665_v40 = vpop.f32.mrb[5].mxu1  ;;  %v3517_v28 = vld [vmem:[#allocation7 + $0x88] sm:$0xff]   ;;  %3150 = vmatprep.subr.bf16.mxu0 %v3516_v27 }
 0x287   : > { %v666_v41 = vadd.f32 %v665_v40, %v555_v30  ;;  %v3077_v7 = vpop.f32.mrb[6].mxu1  ;;  %3102 = vmatprep.mubr.bf16.mxu0 %v728_v38  ;;  %v3519_v30 = vld [vmem:[#allocation7 + $0x98] sm:$0xff]   ;;  %v3520_v38 = vld [vmem:[#allocation7 + $0xa0] sm:$0xff]   ;;  %v3521_v8 = vld [vmem:[#allocation7 + $0xa8] sm:$0xff]  }
 0x288   : > { %v677_v42 = vadd.f32 %v3077_v7, %v558_v39  ;;  %v668_v43 = vpop.f32.mrb[7].mxu1  ;;  %3103 = vmatmul.mubr.bf16.vlgmr.msra.gmra.mrb[16].mxu0 %v729_v29  ;;  %v718_v45 = vmax.f32 %v674_v10, 0.0  ;;  %v3518_v29 = vld [vmem:[#allocation7 + $0x90] sm:$0xff]   ;;  %v754_v10 = vld [vmem:[#allocation8 + $0x200] sm:$0xff] }
 0x289   : > { %v669_v44 = vadd.f32 %v668_v43, %v556_v6  ;;  %v716_v47 = vmax.f32 %v666_v41, 0.0  ;;  %3151 = vmatpush3.bf16.msra.mxu0 %v3516_v27  ;;  %v756_v39 = vld [vmem:[#allocation8 + $0x210] sm:$0xff]  ;;  %v757_v6 = vld [vmem:[#allocation8 + $0x218] sm:$0xff] }
 0x28a   : > { %v719_v46 = vmax.f32 %v677_v42, 0.0  ;;  %3152 = vmatprep.subr.bf16.mxu0 %v3517_v28  ;;  %v755_v42 = vld [vmem:[#allocation8 + $0x208] sm:$0xff] }
 0x28b   : > { %v717_v48 = vmax.f32 %v669_v44, 0.0 }
 0x28c   : > { %v731_v50 = vpack.c.bf16 %v719_v46, %v718_v45 }
 0x28d   : > { %v730_v52 = vpack.c.bf16 %v717_v48, %v716_v47  ;;  %v3080_v15 = vpop.f32.mrb[8].mxu1  ;;  %3153 = vmatpush3.bf16.msra.mxu0 %v3517_v28  ;;  %v768_v28 = vld [vmem:[#allocation8 + $0x270] sm:$0xff] }
 0x28e   : > { %v690_v17 = vadd.f32 %v3080_v15, %v561_v49  ;;  %v681_v54 = vpop.f32.mrb[9].mxu1  ;;  %3154 = vmatprep.subr.bf16.mxu0 %v3518_v29 }
 0x28f   : > { %v682_v55 = vadd.f32 %v681_v54, %v559_v51  ;;  %v3081_v14 = vpop.f32.mrb[10].mxu1  ;;  %3106 = vmatprep.mubr.bf16.mxu0 %v730_v52  ;;  %v760_v52 = vld [vmem:[#allocation8 + $0x230] sm:$0xff] }
 0x290   : > { %v693_v56 = vadd.f32 %v3081_v14, %v562_v53  ;;  %v684_v57 = vpop.f32.mrb[11].mxu1  ;;  %3107 = vmatmul.mubr.bf16.gmra.mrb[20].mxu0 %v731_v50  ;;  %v722_v59 = vmax.f32 %v690_v17, 0.0  ;;  %v758_v53 = vld [vmem:[#allocation8 + $0x220] sm:$0xff] }
 0x291   : > { %v685_v58 = vadd.f32 %v684_v57, %v560_v13  ;;  %v720_v61 = vmax.f32 %v682_v55, 0.0  ;;  %3155 = vmatpush3.bf16.msra.mxu0 %v3518_v29  ;;  %v761_v13 = vld [vmem:[#allocation8 + $0x238] sm:$0xff] }
 0x292   : > { %v723_v60 = vmax.f32 %v693_v56, 0.0  ;;  %3156 = vmatprep.subr.bf16.mxu0 %v3519_v30  ;;  %v759_v56 = vld [vmem:[#allocation8 + $0x228] sm:$0xff] }
 0x293   : > { %v721_v62 = vmax.f32 %v685_v58, 0.0 }
 0x294   : > { %v733_v3 = vpack.c.bf16 %v723_v60, %v722_v59 }
 0x295   : > { %v732_v24 = vpack.c.bf16 %v721_v62, %v720_v61  ;;  %v3084_v20 = vpop.f32.mrb[12].mxu1  ;;  %3157 = vmatpush3.bf16.msra.mxu0 %v3519_v30  ;;  %v766_v30 = vld [vmem:[#allocation8 + $0x260] sm:$0xff] }
 0x296   : > { %v706_v25 = vadd.f32 %v3084_v20, %v565_v63  ;;  %v697_v9 = vpop.f32.mrb[13].mxu1  ;;  %3158 = vmatprep.subr.bf16.mxu0 %v3520_v38 }
 0x297   : > { %v698_v4 = vadd.f32 %v697_v9, %v563_v5  ;;  %v3085_v12 = vpop.f32.mrb[14].mxu1  ;;  %3110 = vmatprep.mubr.bf16.mxu0 %v732_v24  ;;  %v764_v24 = vld [vmem:[#allocation8 + $0x250] sm:$0xff] }
 0x298   : > { %v709_v0 = vadd.f32 %v3085_v12, %v566_v22  ;;  %v700_v1 = vpop.f32.mrb[15].mxu1  ;;  %3111 = vmatmul.mubr.bf16.gmra.mrb[24].mxu0 %v733_v3  ;;  %v726_v18 = vmax.f32 %v706_v25, 0.0  ;;  %v762_v22 = vld [vmem:[#allocation8 + $0x240] sm:$0xff] }
 0x299   : > { %v701_v16 = vadd.f32 %v700_v1, %v564_v2  ;;  %v724_v21 = vmax.f32 %v698_v4, 0.0  ;;  %3159 = vmatpush3.bf16.msra.mxu0 %v3520_v38  ;;  %v765_v2 = vld [vmem:[#allocation8 + $0x258] sm:$0xff] }
 0x29a   : > { %v727_v19 = vmax.f32 %v709_v0, 0.0  ;;  %3160 = vmatprep.subr.bf16.mxu0 %v3521_v8  ;;  %v763_v0 = vld [vmem:[#allocation8 + $0x248] sm:$0xff] }
 0x29b   : > { %v725_v23 = vmax.f32 %v701_v16, 0.0 }
 0x29c   : > { %v735_v11 = vpack.c.bf16 %v727_v19, %v726_v18 }
 0x29d   : > { %v734_v26 = vpack.c.bf16 %v725_v23, %v724_v21  ;;  %3161 = vmatpush3.bf16.msra.mxu0 %v3521_v8 }
 0x29f   : > { %3114 = vmatprep.mubr.bf16.mxu0 %v734_v26 }
 0x2a0   : > { %3115 = vmatmul.mubr.bf16.gmra.mrb[28].mxu0 %v735_v11 }
 0x35b   : > { %v3104_v40 = vpop.f32.mrb[16].mxu0 }
 0x35c   : > { %v4300_v41 = vadd.f32 %v3104_v40, %v756_v39  ;;  %v852_v7 = vpop.f32.mrb[17].mxu0  ;;  %v769_v39 = vld [vmem:[#allocation8 + $0x278] sm:$0xff] }
 0x35d   : > { %v4302_v43 = vadd.f32 %v852_v7, %v754_v10  ;;  %v3105_v44 = vpop.f32.mrb[18].mxu0 }
 0x35e   : > { %v4304_v45 = vadd.f32 %v3105_v44, %v757_v6  ;;  %v855_v46 = vpop.f32.mrb[19].mxu0  ;;  %v917_v48 = vmax.f32 %v4300_v41, 0.0  ;;  %v767_v6 = vld [vmem:[#allocation8 + $0x268] sm:$0xff]  ;;  %v1043_v41 = vld [vmem:[#allocation8 + $0xb0] sm:$0xff] }
 0x35f   : > { %v4306_v47 = vadd.f32 %v855_v46, %v755_v42  ;;  %v915_v50 = vmax.f32 %v4302_v43, 0.0 }
 0x360   : > { %v918_v49 = vmax.f32 %v4304_v45, 0.0 }
 0x361   : > { %v916_v51 = vmax.f32 %v4306_v47, 0.0 }
 0x362   : > { %v932_v15 = vpack.c.bf16 %v918_v49, %v917_v48 }
 0x363   : > { %v931_v17 = vpack.c.bf16 %v916_v51, %v915_v50  ;;  %v3108_v54 = vpop.f32.mrb[20].mxu0 }
 0x364   : > { %v4320_v55 = vadd.f32 %v3108_v54, %v760_v52  ;;  %v868_v14 = vpop.f32.mrb[21].mxu0 }
 0x365   : > { %v4322_v57 = vadd.f32 %v868_v14, %v758_v53  ;;  %v3109_v58 = vpop.f32.mrb[22].mxu0  ;;  %3118 = vmatprep.subr.bf16.mxu1 %v931_v17 }
 0x366   : > { %v4324_v59 = vadd.f32 %v3109_v58, %v761_v13  ;;  %v871_v60 = vpop.f32.mrb[23].mxu0  ;;  %3119 = vmatpush3.bf16.msra.mxu1 %v931_v17  ;;  %v921_v62 = vmax.f32 %v4320_v55, 0.0  ;;  %v3523_v58 = vld [vmem:[#allocation7 + $0xb8] sm:$0xff]  }
 0x367   : > { %v4326_v61 = vadd.f32 %v871_v60, %v759_v56  ;;  %3120 = vmatprep.subr.bf16.mxu1 %v932_v15  ;;  %v919_v3 = vmax.f32 %v4322_v57, 0.0  ;;  %v3522_v56 = vld [vmem:[#allocation7 + $0xb0] sm:$0xff]   ;;  %v3524_v60 = vld [vmem:[#allocation7 + $0xc0] sm:$0xff]   ;;  %v1048_v57 = vld [vmem:[#allocation8 + $0xd8] sm:$0xff] }
 0x368   : > { %v922_v63 = vmax.f32 %v4324_v59, 0.0  ;;  %3162 = vmatprep.subr.bf16.mxu0 %v3522_v56  ;;  %v1059_v43 = vmul.f32 %v1043_v41, %v921_v62 }
 0x369   : > { %v920_v5 = vmax.f32 %v4326_v61, 0.0  ;;  %3163 = vmatpush3.bf16.msra.mxu0 %v3522_v56  ;;  %v1047_v56 = vld [vmem:[#allocation8 + $0xd0] sm:$0xff] }
 0x36a   : > { %v934_v20 = vpack.c.bf16 %v922_v63, %v921_v62  ;;  %3121 = vmatpush3.bf16.msra.mxu1 %v932_v15  ;;  %3164 = vmatprep.subr.bf16.mxu0 %v3523_v58 }
 0x36b   : > { %v933_v25 = vpack.c.bf16 %v920_v5, %v919_v3  ;;  %v3112_v9 = vpop.f32.mrb[24].mxu0 }
 0x36c   : > { %v4340_v4 = vadd.f32 %v3112_v9, %v764_v24  ;;  %v884_v12 = vpop.f32.mrb[25].mxu0  ;;  %v1040_v24 = vld [vmem:[#allocation8 + $0x98] sm:$0xff] }
 0x36d   : > { %v4342_v1 = vadd.f32 %v884_v12, %v762_v22  ;;  %v3113_v16 = vpop.f32.mrb[26].mxu0  ;;  %3122 = vmatprep.subr.bf16.mxu1 %v933_v25  ;;  %3165 = vmatpush3.bf16.msra.mxu0 %v3523_v58  ;;  %v1038_v22 = vld [vmem:[#allocation8 + $0x88] sm:$0xff] }
 0x36e   : > { %v4344_v18 = vadd.f32 %v3113_v16, %v765_v2  ;;  %v887_v19 = vpop.f32.mrb[27].mxu0  ;;  %3123 = vmatpush3.bf16.msra.mxu1 %v933_v25  ;;  %v925_v23 = vmax.f32 %v4340_v4, 0.0 }
 0x36f   : > { %v4346_v21 = vadd.f32 %v887_v19, %v763_v0  ;;  %3124 = vmatprep.subr.bf16.mxu1 %v934_v20  ;;  %v923_v26 = vmax.f32 %v4342_v1, 0.0  ;;  %v1056_v0 = vmul.f32 %v1040_v24, %v918_v49  ;;  %v1051_v24 = vld [vmem:[#allocation8 + $0xf0] sm:$0xff]  ;;  %v1052_v1 = vld [vmem:[#allocation8 + $0xf8] sm:$0xff] }
 0x370   : > { %v926_v11 = vmax.f32 %v4344_v18, 0.0 }
 0x371   : > { %v924_v27 = vmax.f32 %v4346_v21, 0.0 }
 0x372   : > { %v936_v29 = vpack.c.bf16 %v926_v11, %v925_v23  ;;  %3125 = vmatpush3.bf16.msra.mxu1 %v934_v20 }
 0x373   : > { %v935_v38 = vpack.c.bf16 %v924_v27, %v923_v26  ;;  %v3116_v8 = vpop.f32.mrb[28].mxu0 }
 0x374   : > { %v4360_v10 = vadd.f32 %v3116_v8, %v768_v28  ;;  %v900_v40 = vpop.f32.mrb[29].mxu0  ;;  %v1054_v28 = vmul.f32 %v1038_v22, %v916_v51  ;;  %v1041_v8 = vld [vmem:[#allocation8 + $0xa0] sm:$0xff] }
 0x375   : > { %v4362_v7 = vadd.f32 %v900_v40, %v766_v30  ;;  %v3117_v42 = vpop.f32.mrb[30].mxu0  ;;  %3126 = vmatprep.subr.bf16.mxu1 %v935_v38  ;;  %v1044_v40 = vld [vmem:[#allocation8 + $0xb8] sm:$0xff]  ;;  %v1057_v45 = vmul.f32 %v1041_v8, %v919_v3  ;;  %v1063_v3 = vmul.f32 %v1047_v56, %v925_v23  ;;  %v1049_v22 = vld [vmem:[#allocation8 + $0xe0] sm:$0xff] }
 0x376   : > { %v4364_v44 = vadd.f32 %v3117_v42, %v769_v39  ;;  %v903_v46 = vpop.f32.mrb[31].mxu0  ;;  %3127 = vmatpush3.bf16.msra.mxu1 %v935_v38  ;;  %v929_v15 = vmax.f32 %v4360_v10, 0.0  ;;  %v1060_v51 = vmul.f32 %v1044_v40, %v922_v63 }
 0x377   : > { %v4366_v52 = vadd.f32 %v903_v46, %v767_v6  ;;  %3128 = vmatprep.subr.bf16.mxu1 %v936_v29  ;;  %v927_v17 = vmax.f32 %v4362_v7, 0.0  ;;  %v3628_v7 = vld [vmem:[%s4160_s14] sm:$0xff]  }
 0x378   : > { %v930_v53 = vmax.f32 %v4364_v44, 0.0  ;;  %v1113_v44 = vld [vmem:[#allocation8 + $0x290] sm:$0xff] }
 0x379   : > { %v928_v54 = vmax.f32 %v4366_v52, 0.0  ;;  %v1065_v18 = vmul.f32 %v1049_v22, %v927_v17  ;;  %v1114_v52 = vld [vmem:[#allocation8 + $0x298] sm:$0xff] }
 0x37a   : > { %v938_v13 = vpack.c.bf16 %v930_v53, %v929_v15  ;;  %3129 = vmatpush3.bf16.msra.mxu1 %v936_v29 }
 0x37b   : > { %v937_v14 = vpack.c.bf16 %v928_v54, %v927_v17  ;;  %v3530_v17 = vld [vmem:[#allocation7 + $0xf0] sm:$0xff]  }
 0x37d   : > { %3130 = vmatprep.subr.bf16.mxu1 %v937_v14 }
 0x37e   : > { %3131 = vmatpush3.bf16.msra.mxu1 %v937_v14 }
 0x37f   : > { %3132 = vmatprep.subr.bf16.mxu1 %v938_v13 }
 0x382   : > { %3133 = vmatpush3.bf16.msra.mxu1 %v938_v13 }
 0x383   : > { %3182 = vmatprep.subr.bf16.mxu1 %v3524_v60 }
 0x385   : > { %3135 = vmatmul.mubr.bf16.vlgmr.msra.gmra.mrb[16].mxu1 %v4256_v31  ;;  %v3525_v31 = vld [vmem:[#allocation7 + $0xc8] sm:$0xff]  }
 0x386   : > { %3138 = vmatprep.mubr.bf16.mxu1 %v4259_v32  ;;  %3183 = vmatpush3.bf16.msra.mxu1 %v3524_v60  ;;  %v3526_v32 = vld [vmem:[#allocation7 + $0xd0] sm:$0xff]   ;;  %v1045_v60 = vld [vmem:[#allocation8 + $0xc0] sm:$0xff] }
 0x387   : > { %3184 = vmatprep.subr.bf16.mxu1 %v3525_v31  ;;  %v1061_v59 = vmul.f32 %v1045_v60, %v923_v26  ;;  %v1067_v26 = vmul.f32 %v1051_v24, %v929_v15 }
 0x38a   : > { %3185 = vmatpush3.bf16.msra.mxu1 %v3525_v31 }
 0x38b   : > { %3186 = vmatprep.subr.bf16.mxu1 %v3526_v32 }
 0x38d   : > { %3139 = vmatmul.mubr.bf16.gmra.mrb[20].mxu1 %v4264_v33  ;;  %v3527_v33 = vld [vmem:[#allocation7 + $0xd8] sm:$0xff]  }
 0x38e   : > { %3142 = vmatprep.mubr.bf16.mxu1 %v4267_v34  ;;  %3187 = vmatpush3.bf16.msra.mxu1 %v3526_v32  ;;  %v3528_v34 = vld [vmem:[#allocation7 + $0xe0] sm:$0xff]   ;;  %v1046_v32 = vld [vmem:[#allocation8 + $0xc8] sm:$0xff] }
 0x38f   : > { %3188 = vmatprep.subr.bf16.mxu1 %v3527_v33 }
 0x392   : > { %3189 = vmatpush3.bf16.msra.mxu1 %v3527_v33 }
 0x393   : > { %3190 = vmatprep.subr.bf16.mxu1 %v3528_v34 }
 0x395   : > { %3143 = vmatmul.mubr.bf16.gmra.mrb[24].mxu1 %v4272_v35  ;;  %v3529_v35 = vld [vmem:[#allocation7 + $0xe8] sm:$0xff]  }
 0x396   : > { %3146 = vmatprep.mubr.bf16.mxu1 %v4275_v36  ;;  %3191 = vmatpush3.bf16.msra.mxu1 %v3528_v34  ;;  %v1039_v36 = vld [vmem:[#allocation8 + $0x90] sm:$0xff] }
 0x397   : > { %3192 = vmatprep.subr.bf16.mxu1 %v3529_v35  ;;  %v1055_v20 = vmul.f32 %v1039_v36, %v917_v48  ;;  %v1062_v36 = vmul.f32 %v1046_v32, %v924_v27  ;;  %v1068_v27 = vmul.f32 %v1052_v1, %v930_v53  ;;  %v1111_v53 = vld [vmem:[#allocation8 + $0x280] sm:$0xff] }
 0x39a   : > { %3193 = vmatpush3.bf16.msra.mxu1 %v3529_v35 }
 0x39b   : > { %3194 = vmatprep.subr.bf16.mxu1 %v3530_v17 }
 0x39d   : > { %3147 = vmatmul.mubr.bf16.gmra.mrb[28].mxu1 %v4280_v37  ;;  %v1037_v37 = vld [vmem:[#allocation8 + $0x80] sm:$0xff] }
 0x39e   : > { %v1053_v9 = vmul.f32 %v1037_v37, %v915_v50  ;;  %v1042_v50 = vld [vmem:[#allocation8 + $0xa8] sm:$0xff]  ;;  %3195 = vmatpush3.bf16.msra.mxu1 %v3530_v17 }
 0x39f   : > { %v1058_v13 = vmul.f32 %v1042_v50, %v920_v5  ;;  %v1064_v5 = vmul.f32 %v1048_v57, %v926_v11 }
 0x458   : > { %v3136_v25 = vpop.f32.mrb[16].mxu1 }
 0x459   : > { %v1071_v2 = vadd.f32 %v3136_v25, %v1055_v20  ;;  %v973_v12 = vpop.f32.mrb[17].mxu1 }
 0x45a   : > { %v1069_v16 = vadd.f32 %v1053_v9, %v973_v12  ;;  %v3137_v19 = vpop.f32.mrb[18].mxu1  ;;  %v1050_v9 = vld [vmem:[#allocation8 + $0xe8] sm:$0xff] }
 0x45b   : > { %v1072_v29 = vadd.f32 %v3137_v19, %v1056_v0  ;;  %v976_v30 = vpop.f32.mrb[19].mxu1 }
 0x45c   : > { %v1070_v38 = vadd.f32 %v1054_v28, %v976_v30  ;;  %v3531_v30 = vld [vmem:[#allocation7 + $0xf8] sm:$0xff]  }
 0x45d   : > { %v1086_v48 = vpack.c.bf16 %v1072_v29, %v1071_v2  ;;  %3196 = vmatprep.subr.bf16.mxu1 %v3531_v30 }
 0x45e   : > { %v1085_v39 = vpack.c.bf16 %v1070_v38, %v1069_v16  ;;  %v1066_v16 = vmul.f32 %v1050_v9, %v928_v54  ;;  %3197 = vmatpush3.bf16.msra.mxu1 %v3531_v30 }
 0x460   : > { %v3140_v6 = vpop.f32.mrb[20].mxu1  ;;  %3166 = vmatprep.mubr.bf16.mxu0 %v1085_v39 }
 0x461   : > { %v1075_v49 = vadd.f32 %v3140_v6, %v1059_v43  ;;  %v989_v47 = vpop.f32.mrb[21].mxu1  ;;  %3167 = vmatmul.mubr.bf16.vlgmr.msra.gmra.mrb[32].mxu0 %v1086_v48  ;;  %v1112_v48 = vld [vmem:[#allocation8 + $0x288] sm:$0xff] }
 0x462   : > { %v1073_v42 = vadd.f32 %v1057_v45, %v989_v47  ;;  %v3141_v46 = vpop.f32.mrb[22].mxu1 }
 0x463   : > { %v1076_v14 = vadd.f32 %v3141_v46, %v1060_v51  ;;  %v992_v55 = vpop.f32.mrb[23].mxu1  ;;  %v1117_v51 = vld [vmem:[#allocation8 + $0x2b0] sm:$0xff]  ;;  %v1115_v46 = vld [vmem:[#allocation8 + $0x2a0] sm:$0xff] }
 0x464   : > { %v1074_v62 = vadd.f32 %v1058_v13, %v992_v55  ;;  %v1118_v55 = vld [vmem:[#allocation8 + $0x2b8] sm:$0xff] }
 0x465   : > { %v1088_v58 = vpack.c.bf16 %v1076_v14, %v1075_v49 }
 0x466   : > { %v1087_v31 = vpack.c.bf16 %v1074_v62, %v1073_v42 }
 0x468   : > { %v3144_v33 = vpop.f32.mrb[24].mxu1  ;;  %3170 = vmatprep.mubr.bf16.mxu0 %v1087_v31 }
 0x469   : > { %v1079_v63 = vadd.f32 %v3144_v33, %v1063_v3  ;;  %v1005_v61 = vpop.f32.mrb[25].mxu1  ;;  %3171 = vmatmul.mubr.bf16.gmra.mrb[36].mxu0 %v1088_v58  ;;  %v1116_v58 = vld [vmem:[#allocation8 + $0x2a8] sm:$0xff] }
 0x46a   : > { %v1077_v34 = vadd.f32 %v1061_v59, %v1005_v61  ;;  %v3145_v35 = vpop.f32.mrb[26].mxu1 }
 0x46b   : > { %v1080_v37 = vadd.f32 %v3145_v35, %v1064_v5  ;;  %v1008_v4 = vpop.f32.mrb[27].mxu1  ;;  %v1121_v5 = vld [vmem:[#allocation8 + $0x2d0] sm:$0xff]  ;;  %v1119_v35 = vld [vmem:[#allocation8 + $0x2c0] sm:$0xff] }
 0x46c   : > { %v1078_v23 = vadd.f32 %v1062_v36, %v1008_v4  ;;  %v1122_v4 = vld [vmem:[#allocation8 + $0x2d8] sm:$0xff] }
 0x46d   : > { %v1090_v20 = vpack.c.bf16 %v1080_v37, %v1079_v63 }
 0x46e   : > { %v1089_v25 = vpack.c.bf16 %v1078_v23, %v1077_v34 }
 0x470   : > { %v3148_v2 = vpop.f32.mrb[28].mxu1  ;;  %3174 = vmatprep.mubr.bf16.mxu0 %v1089_v25 }
 0x471   : > { %v1083_v21 = vadd.f32 %v3148_v2, %v1067_v26  ;;  %v1021_v11 = vpop.f32.mrb[29].mxu1  ;;  %3175 = vmatmul.mubr.bf16.gmra.mrb[40].mxu0 %v1090_v20  ;;  %v1120_v20 = vld [vmem:[#allocation8 + $0x2c8] sm:$0xff] }
 0x472   : > { %v1081_v12 = vadd.f32 %v1065_v18, %v1021_v11  ;;  %v3149_v0 = vpop.f32.mrb[30].mxu1 }
 0x473   : > { %v1084_v10 = vadd.f32 %v3149_v0, %v1068_v27  ;;  %v1024_v15 = vpop.f32.mrb[31].mxu1  ;;  %v1125_v27 = vld [vmem:[#allocation8 + $0x2f0] sm:$0xff]  ;;  %v1123_v0 = vld [vmem:[#allocation8 + $0x2e0] sm:$0xff] }
 0x474   : > { %v1082_v19 = vadd.f32 %v1066_v16, %v1024_v15  ;;  %v1126_v15 = vld [vmem:[#allocation8 + $0x2f8] sm:$0xff] }
 0x475   : > { %v1092_v28 = vpack.c.bf16 %v1084_v10, %v1083_v21 }
 0x476   : > { %v1091_v29 = vpack.c.bf16 %v1082_v19, %v1081_v12 }
 0x478   : > { %3178 = vmatprep.mubr.bf16.mxu0 %v1091_v29  ;;  %v1124_v29 = vld [vmem:[#allocation8 + $0x2e8] sm:$0xff] }
 0x479   : > { %3179 = vmatmul.mubr.bf16.gmra.mrb[44].mxu0 %v1092_v28 }
 0x47a   : > { %3230 = vmatprep.mubr.bf16.mxu0 %v3628_v7 }
 0x534   : > { %v3168_v38 = vpop.f32.mrb[32].mxu0 }
 0x535   : > { %v1218_v54 = vadd.f32 %v3168_v38, %v1113_v44  ;;  %v1209_v41 = vpop.f32.mrb[33].mxu0 }
 0x536   : > { %v1210_v8 = vadd.f32 %v1209_v41, %v1111_v53  ;;  %v3169_v39 = vpop.f32.mrb[34].mxu0 }
 0x537   : > { %v1221_v40 = vadd.f32 %v3169_v39, %v1114_v52  ;;  %v1212_v43 = vpop.f32.mrb[35].mxu0  ;;  %v1274_v6 = vmax.f32 %v1218_v54, 0.0  ;;  %v3532_v39 = vld [vmem:[#allocation7 + $0x100] sm:$0xff]  }
 0x538   : > { %v1213_v50 = vadd.f32 %v1212_v43, %v1112_v48  ;;  %v1272_v49 = vmax.f32 %v1210_v8, 0.0  ;;  %3246 = vmatprep.subr.bf16.mxu1 %v3532_v39  ;;  %v3534_v43 = vld [vmem:[#allocation7 + $0x110] sm:$0xff]  }
 0x539   : > { %v1275_v45 = vmax.f32 %v1221_v40, 0.0  ;;  %v3533_v40 = vld [vmem:[#allocation7 + $0x108] sm:$0xff]  }
 0x53a   : > { %v1273_v47 = vmax.f32 %v1213_v50, 0.0  ;;  %v3535_v50 = vld [vmem:[#allocation7 + $0x118] sm:$0xff]  }
 0x53b   : > { %v1289_v42 = vpack.c.bf16 %v1275_v45, %v1274_v6  ;;  %v3536_v6 = vld [vmem:[#allocation7 + $0x120] sm:$0xff]   ;;  %v3537_v45 = vld [vmem:[#allocation7 + $0x128] sm:$0xff]  }
 0x53c   : > { %v1288_v13 = vpack.c.bf16 %v1273_v47, %v1272_v49  ;;  %v3172_v14 = vpop.f32.mrb[36].mxu0  ;;  %v1316_v49 = vld [vmem:[#allocation8 + $0x310] sm:$0xff]  ;;  %v1314_v47 = vld [vmem:[#allocation8 + $0x300] sm:$0xff] }
 0x53d   : > { %v1234_v62 = vadd.f32 %v3172_v14, %v1117_v51  ;;  %v1225_v56 = vpop.f32.mrb[37].mxu0  ;;  %v1315_v14 = vld [vmem:[#allocation8 + $0x308] sm:$0xff] }
 0x53e   : > { %v1226_v60 = vadd.f32 %v1225_v56, %v1115_v46  ;;  %v3173_v31 = vpop.f32.mrb[38].mxu0  ;;  %3198 = vmatprep.mubr.bf16.mxu1 %v1288_v13 }
 0x53f   : > { %v1237_v57 = vadd.f32 %v3173_v31, %v1118_v55  ;;  %v1228_v3 = vpop.f32.mrb[39].mxu0  ;;  %3199 = vmatmul.mubr.bf16.vlgmr.msra.gmra.mrb[32].mxu1 %v1289_v42  ;;  %v1278_v33 = vmax.f32 %v1234_v62, 0.0  ;;  %v1317_v42 = vld [vmem:[#allocation8 + $0x318] sm:$0xff] }
 0x540   : > { %v1229_v32 = vadd.f32 %v1228_v3, %v1116_v58  ;;  %v1276_v63 = vmax.f32 %v1226_v60, 0.0  ;;  %3247 = vmatpush3.bf16.msra.mxu1 %v3532_v39 }
 0x541   : > { %v1279_v59 = vmax.f32 %v1237_v57, 0.0  ;;  %3248 = vmatprep.subr.bf16.mxu1 %v3533_v40 }
 0x542   : > { %v1277_v61 = vmax.f32 %v1229_v32, 0.0 }
 0x543   : > { %v1291_v34 = vpack.c.bf16 %v1279_v59, %v1278_v33  ;;  %v1320_v33 = vld [vmem:[#allocation8 + $0x330] sm:$0xff] }
 0x544   : > { %v1290_v36 = vpack.c.bf16 %v1277_v61, %v1276_v63  ;;  %v3176_v37 = vpop.f32.mrb[40].mxu0  ;;  %3249 = vmatpush3.bf16.msra.mxu1 %v3533_v40  ;;  %v1318_v63 = vld [vmem:[#allocation8 + $0x320] sm:$0xff] }
 0x545   : > { %v1250_v23 = vadd.f32 %v3176_v37, %v1121_v5  ;;  %v1241_v24 = vpop.f32.mrb[41].mxu0  ;;  %3250 = vmatprep.subr.bf16.mxu1 %v3534_v43  ;;  %v1319_v37 = vld [vmem:[#allocation8 + $0x328] sm:$0xff] }
 0x546   : > { %v1242_v22 = vadd.f32 %v1241_v24, %v1119_v35  ;;  %v3177_v25 = vpop.f32.mrb[42].mxu0  ;;  %3202 = vmatprep.mubr.bf16.mxu1 %v1290_v36 }
 0x547   : > { %v1253_v1 = vadd.f32 %v3177_v25, %v1122_v4  ;;  %v1244_v26 = vpop.f32.mrb[43].mxu0  ;;  %3203 = vmatmul.mubr.bf16.gmra.mrb[36].mxu1 %v1291_v34  ;;  %v1282_v2 = vmax.f32 %v1250_v23, 0.0  ;;  %v1321_v34 = vld [vmem:[#allocation8 + $0x338] sm:$0xff] }
 0x548   : > { %v1245_v9 = vadd.f32 %v1244_v26, %v1120_v20  ;;  %v1280_v21 = vmax.f32 %v1242_v22, 0.0  ;;  %3251 = vmatpush3.bf16.msra.mxu1 %v3534_v43  ;;  %v1327_v43 = vld [vmem:[#allocation8 + $0x368] sm:$0xff] }
 0x549   : > { %v1283_v18 = vmax.f32 %v1253_v1, 0.0  ;;  %3252 = vmatprep.subr.bf16.mxu1 %v3535_v50 }
 0x54a   : > { %v1281_v11 = vmax.f32 %v1245_v9, 0.0 }
 0x54b   : > { %v1293_v12 = vpack.c.bf16 %v1283_v18, %v1282_v2  ;;  %v1324_v2 = vld [vmem:[#allocation8 + $0x350] sm:$0xff] }
 0x54c   : > { %v1292_v16 = vpack.c.bf16 %v1281_v11, %v1280_v21  ;;  %v3180_v10 = vpop.f32.mrb[44].mxu0  ;;  %3253 = vmatpush3.bf16.msra.mxu1 %v3535_v50  ;;  %v1322_v21 = vld [vmem:[#allocation8 + $0x340] sm:$0xff] }
 0x54d   : > { %v1266_v19 = vadd.f32 %v3180_v10, %v1125_v27  ;;  %v1257_v28 = vpop.f32.mrb[45].mxu0  ;;  %3254 = vmatprep.subr.bf16.mxu1 %v3536_v6  ;;  %v1323_v10 = vld [vmem:[#allocation8 + $0x348] sm:$0xff] }
 0x54e   : > { %v1258_v7 = vadd.f32 %v1257_v28, %v1123_v0  ;;  %v3181_v17 = vpop.f32.mrb[46].mxu0  ;;  %3206 = vmatprep.mubr.bf16.mxu1 %v1292_v16 }
 0x54f   : > { %v1269_v30 = vadd.f32 %v3181_v17, %v1126_v15  ;;  %v1260_v44 = vpop.f32.mrb[47].mxu0  ;;  %3207 = vmatmul.mubr.bf16.gmra.mrb[40].mxu1 %v1293_v12  ;;  %v1286_v38 = vmax.f32 %v1266_v19, 0.0  ;;  %v1325_v12 = vld [vmem:[#allocation8 + $0x358] sm:$0xff] }
 0x550   : > { %v1261_v53 = vadd.f32 %v1260_v44, %v1124_v29  ;;  %v1284_v54 = vmax.f32 %v1258_v7, 0.0  ;;  %3255 = vmatpush3.bf16.msra.mxu1 %v3536_v6 }
 0x551   : > { %v1287_v52 = vmax.f32 %v1269_v30, 0.0  ;;  %3256 = vmatprep.subr.bf16.mxu1 %v3537_v45 }
 0x552   : > { %v1285_v41 = vmax.f32 %v1261_v53, 0.0 }
 0x553   : > { %v1295_v48 = vpack.c.bf16 %v1287_v52, %v1286_v38  ;;  %v1328_v38 = vld [vmem:[#allocation8 + $0x370] sm:$0xff] }
 0x554   : > { %v1294_v8 = vpack.c.bf16 %v1285_v41, %v1284_v54  ;;  %3257 = vmatpush3.bf16.msra.mxu1 %v3537_v45  ;;  %v1326_v54 = vld [vmem:[#allocation8 + $0x360] sm:$0xff] }
 0x556   : > { %3210 = vmatprep.mubr.bf16.mxu1 %v1294_v8  ;;  %v1329_v8 = vld [vmem:[#allocation8 + $0x378] sm:$0xff] }
 0x557   : > { %3211 = vmatmul.mubr.bf16.gmra.mrb[44].mxu1 %v1295_v48 }
 0x612   : > { %v3200_v51 = vpop.f32.mrb[32].mxu1 }
 0x613   : > { %v4420_v46 = vadd.f32 %v3200_v51, %v1316_v49  ;;  %v1412_v13 = vpop.f32.mrb[33].mxu1 }
 0x614   : > { %v4422_v55 = vadd.f32 %v1412_v13, %v1314_v47  ;;  %v3201_v62 = vpop.f32.mrb[34].mxu1 }
 0x615   : > { %v4424_v56 = vadd.f32 %v3201_v62, %v1317_v42  ;;  %v1415_v58 = vpop.f32.mrb[35].mxu1  ;;  %v1477_v31 = vmax.f32 %v4420_v46, 0.0  ;;  %v1603_v46 = vld [vmem:[#allocation8 + $0x130] sm:$0xff] }
 0x616   : > { %v4426_v60 = vadd.f32 %v1415_v58, %v1315_v14  ;;  %v1475_v3 = vmax.f32 %v4422_v55, 0.0 }
 0x617   : > { %v1478_v57 = vmax.f32 %v4424_v56, 0.0 }
 0x618   : > { %v1476_v32 = vmax.f32 %v4426_v60, 0.0 }
 0x619   : > { %v1492_v59 = vpack.c.bf16 %v1478_v57, %v1477_v31 }
 0x61a   : > { %v1491_v61 = vpack.c.bf16 %v1476_v32, %v1475_v3  ;;  %v3204_v5 = vpop.f32.mrb[36].mxu1 }
 0x61b   : > { %v4440_v35 = vadd.f32 %v3204_v5, %v1320_v33  ;;  %v1428_v36 = vpop.f32.mrb[37].mxu1  ;;  %v3629_v33 = vld [vmem:[%s4160_s14 + $0x8] sm:$0xff]  }
 0x61c   : > { %v4442_v4 = vadd.f32 %v1428_v36, %v1318_v63  ;;  %v3205_v23 = vpop.f32.mrb[38].mxu1  ;;  %3214 = vmatprep.subr.bf16.mxu0 %v1491_v61  ;;  %v3631_v63 = vld [vmem:[%s4160_s14 + $0x18] sm:$0xff]   ;;  %v3633_v5 = vld [vmem:[%s4160_s14 + $0x28] sm:$0xff]  }
 0x61d   : > { %v4444_v24 = vadd.f32 %v3205_v23, %v1321_v34  ;;  %v1431_v20 = vpop.f32.mrb[39].mxu1  ;;  %3215 = vmatpush3.bf16.msra.mxu0 %v1491_v61  ;;  %v1481_v25 = vmax.f32 %v4440_v35, 0.0  ;;  %v3632_v61 = vld [vmem:[%s4160_s14 + $0x20] sm:$0xff]   ;;  %v3634_v34 = vld [vmem:[%s4160_s14 + $0x30] sm:$0xff]   ;;  %v3635_v36 = vld [vmem:[%s4160_s14 + $0x38] sm:$0xff]  }
 0x61e   : > { %v4446_v22 = vadd.f32 %v1431_v20, %v1319_v37  ;;  %3216 = vmatprep.subr.bf16.mxu0 %v1492_v59  ;;  %v1479_v26 = vmax.f32 %v4442_v4, 0.0  ;;  %v3538_v37 = vld [vmem:[#allocation7 + $0x130] sm:$0xff]   ;;  %v3539_v23 = vld [vmem:[#allocation7 + $0x138] sm:$0xff]   ;;  %v3540_v20 = vld [vmem:[#allocation7 + $0x140] sm:$0xff]  }
 0x61f   : > { %v1482_v1 = vmax.f32 %v4444_v24, 0.0  ;;  %3258 = vmatprep.subr.bf16.mxu1 %v3538_v37  ;;  %v1619_v55 = vmul.f32 %v1603_v46, %v1481_v25  ;;  %v1608_v4 = vld [vmem:[#allocation8 + $0x158] sm:$0xff]  ;;  %v1673_v46 = vld [vmem:[#allocation8 + $0x390] sm:$0xff] }
 0x620   : > { %v1480_v9 = vmax.f32 %v4446_v22, 0.0  ;;  %3259 = vmatpush3.bf16.msra.mxu1 %v3538_v37  ;;  %v1607_v37 = vld [vmem:[#allocation8 + $0x150] sm:$0xff] }
 0x621   : > { %v1494_v18 = vpack.c.bf16 %v1482_v1, %v1481_v25  ;;  %3217 = vmatpush3.bf16.msra.mxu0 %v1492_v59  ;;  %v3630_v59 = vld [vmem:[%s4160_s14 + $0x10] sm:$0xff]   ;;  %3260 = vmatprep.subr.bf16.mxu1 %v3539_v23 }
 0x622   : > { %v1493_v11 = vpack.c.bf16 %v1480_v9, %v1479_v26  ;;  %v3208_v27 = vpop.f32.mrb[40].mxu1 }
 0x623   : > { %v4460_v0 = vadd.f32 %v3208_v27, %v1324_v2  ;;  %v1444_v16 = vpop.f32.mrb[41].mxu1  ;;  %v3541_v2 = vld [vmem:[#allocation7 + $0x148] sm:$0xff]  }
 0x624   : > { %v4462_v15 = vadd.f32 %v1444_v16, %v1322_v21  ;;  %v3209_v19 = vpop.f32.mrb[42].mxu1  ;;  %3218 = vmatprep.subr.bf16.mxu0 %v1493_v11  ;;  %3261 = vmatpush3.bf16.msra.mxu1 %v3539_v23  ;;  %v3543_v21 = vld [vmem:[#allocation7 + $0x158] sm:$0xff]   ;;  %v3545_v27 = vld [vmem:[#allocation7 + $0x168] sm:$0xff]   ;;  %v1597_v16 = vld [vmem:[#allocation8 + $0x100] sm:$0xff] }
 0x625   : > { %v4464_v28 = vadd.f32 %v3209_v19, %v1325_v12  ;;  %v1447_v29 = vpop.f32.mrb[43].mxu1  ;;  %3219 = vmatpush3.bf16.msra.mxu0 %v1493_v11  ;;  %v1485_v17 = vmax.f32 %v4460_v0, 0.0  ;;  %v3544_v11 = vld [vmem:[#allocation7 + $0x160] sm:$0xff]   ;;  %v1599_v12 = vld [vmem:[#allocation8 + $0x110] sm:$0xff] }
 0x626   : > { %v4466_v7 = vadd.f32 %v1447_v29, %v1323_v10  ;;  %3220 = vmatprep.subr.bf16.mxu0 %v1494_v18  ;;  %v1483_v44 = vmax.f32 %v4462_v15, 0.0  ;;  %v1600_v10 = vld [vmem:[#allocation8 + $0x118] sm:$0xff]  ;;  %v1615_v19 = vmul.f32 %v1599_v12, %v1477_v31  ;;  %v1598_v29 = vld [vmem:[#allocation8 + $0x108] sm:$0xff] }
 0x627   : > { %v1486_v30 = vmax.f32 %v4464_v28, 0.0  ;;  %v1612_v15 = vld [vmem:[#allocation8 + $0x178] sm:$0xff] }
 0x628   : > { %v1484_v53 = vmax.f32 %v4466_v7, 0.0 }
 0x629   : > { %v1496_v52 = vpack.c.bf16 %v1486_v30, %v1485_v17  ;;  %3221 = vmatpush3.bf16.msra.mxu0 %v1494_v18  ;;  %v3542_v18 = vld [vmem:[#allocation7 + $0x150] sm:$0xff]  }
 0x62a   : > { %v1495_v41 = vpack.c.bf16 %v1484_v53, %v1483_v44  ;;  %v3212_v48 = vpop.f32.mrb[44].mxu1 }
 0x62b   : > { %v4480_v39 = vadd.f32 %v3212_v48, %v1328_v38  ;;  %v1460_v40 = vpop.f32.mrb[45].mxu1  ;;  %v1616_v48 = vmul.f32 %v1600_v10, %v1478_v57  ;;  %v1611_v10 = vld [vmem:[#allocation8 + $0x170] sm:$0xff] }
 0x62c   : > { %v4482_v50 = vadd.f32 %v1460_v40, %v1326_v54  ;;  %v3213_v6 = vpop.f32.mrb[46].mxu1  ;;  %3222 = vmatprep.subr.bf16.mxu0 %v1495_v41 }
 0x62d   : > { %v4484_v45 = vadd.f32 %v3213_v6, %v1329_v8  ;;  %v1463_v49 = vpop.f32.mrb[47].mxu1  ;;  %3223 = vmatpush3.bf16.msra.mxu0 %v1495_v41  ;;  %v1489_v51 = vmax.f32 %v4480_v39, 0.0 }
 0x62e   : > { %v4486_v47 = vadd.f32 %v1463_v49, %v1327_v43  ;;  %3224 = vmatprep.subr.bf16.mxu0 %v1496_v52  ;;  %v1487_v13 = vmax.f32 %v4482_v50, 0.0  ;;  %v1614_v43 = vmul.f32 %v1598_v29, %v1476_v32  ;;  %v1609_v29 = vld [vmem:[#allocation8 + $0x160] sm:$0xff]  ;;  %v3546_v50 = vld [vmem:[#allocation7 + $0x170] sm:$0xff]  }
 0x62f   : > { %v1490_v42 = vmax.f32 %v4484_v45, 0.0  ;;  %v3548_v45 = vld [vmem:[#allocation7 + $0x180] sm:$0xff]  }
 0x630   : > { %v1488_v14 = vmax.f32 %v4486_v47, 0.0  ;;  %v1625_v28 = vmul.f32 %v1609_v29, %v1487_v13  ;;  %3310 = vmatprep.subr.bf16.mxu1 %v3548_v45  ;;  %v3550_v47 = vld [vmem:[#allocation7 + $0x190] sm:$0xff]  }
 0x631   : > { %v1498_v62 = vpack.c.bf16 %v1490_v42, %v1489_v51  ;;  %3225 = vmatpush3.bf16.msra.mxu0 %v1496_v52  ;;  %v1613_v52 = vmul.f32 %v1597_v16, %v1475_v3  ;;  %v1602_v3 = vld [vmem:[#allocation8 + $0x128] sm:$0xff] }
 0x632   : > { %v1497_v58 = vpack.c.bf16 %v1488_v14, %v1487_v13  ;;  %v3547_v13 = vld [vmem:[#allocation7 + $0x178] sm:$0xff]  }
 0x634   : > { %3226 = vmatprep.subr.bf16.mxu0 %v1497_v58 }
 0x635   : > { %3227 = vmatpush3.bf16.msra.mxu0 %v1497_v58  ;;  %v1601_v58 = vld [vmem:[#allocation8 + $0x120] sm:$0xff] }
 0x636   : > { %3228 = vmatprep.subr.bf16.mxu0 %v1498_v62  ;;  %v1617_v56 = vmul.f32 %v1601_v58, %v1479_v26  ;;  %v1623_v26 = vmul.f32 %v1607_v37, %v1485_v17  ;;  %v1675_v37 = vld [vmem:[#allocation8 + $0x3a0] sm:$0xff] }
 0x639   : > { %3229 = vmatpush3.bf16.msra.mxu0 %v1498_v62 }
 0x63a   : > { %3278 = vmatprep.subr.bf16.mxu0 %v3540_v20 }
 0x63c   : > { %3231 = vmatmul.mubr.bf16.vlgmr.msra.gmra.mrb[48].mxu0 %v3629_v33 }
 0x63d   : > { %3234 = vmatprep.mubr.bf16.mxu0 %v3630_v59  ;;  %3279 = vmatpush3.bf16.msra.mxu0 %v3540_v20  ;;  %v1604_v59 = vld [vmem:[#allocation8 + $0x138] sm:$0xff]  ;;  %v1605_v20 = vld [vmem:[#allocation8 + $0x140] sm:$0xff] }
 0x63e   : > { %3280 = vmatprep.subr.bf16.mxu0 %v3541_v2  ;;  %v1620_v32 = vmul.f32 %v1604_v59, %v1482_v1  ;;  %v1621_v24 = vmul.f32 %v1605_v20, %v1483_v44  ;;  %v1627_v44 = vmul.f32 %v1611_v10, %v1489_v51  ;;  %v1679_v10 = vld [vmem:[#allocation8 + $0x3c0] sm:$0xff] }
 0x641   : > { %3281 = vmatpush3.bf16.msra.mxu0 %v3541_v2 }
 0x642   : > { %3282 = vmatprep.subr.bf16.mxu0 %v3542_v18 }
 0x644   : > { %3235 = vmatmul.mubr.bf16.gmra.mrb[52].mxu0 %v3631_v63 }
 0x645   : > { %3238 = vmatprep.mubr.bf16.mxu0 %v3632_v61  ;;  %3283 = vmatpush3.bf16.msra.mxu0 %v3542_v18  ;;  %v1606_v18 = vld [vmem:[#allocation8 + $0x148] sm:$0xff] }
 0x646   : > { %3284 = vmatprep.subr.bf16.mxu0 %v3543_v21  ;;  %v1622_v12 = vmul.f32 %v1606_v18, %v1484_v53  ;;  %v1628_v53 = vmul.f32 %v1612_v15, %v1490_v42  ;;  %v3549_v42 = vld [vmem:[#allocation7 + $0x188] sm:$0xff]  }
 0x647   : > { %v1676_v18 = vld [vmem:[#allocation8 + $0x3a8] sm:$0xff] }
 0x649   : > { %3285 = vmatpush3.bf16.msra.mxu0 %v3543_v21 }
 0x64a   : > { %3286 = vmatprep.subr.bf16.mxu0 %v3544_v11 }
 0x64c   : > { %3239 = vmatmul.mubr.bf16.gmra.mrb[56].mxu0 %v3633_v5 }
 0x64d   : > { %3242 = vmatprep.mubr.bf16.mxu0 %v3634_v34  ;;  %3287 = vmatpush3.bf16.msra.mxu0 %v3544_v11  ;;  %v1618_v34 = vmul.f32 %v1602_v3, %v1480_v9  ;;  %v1624_v9 = vmul.f32 %v1608_v4, %v1486_v30  ;;  %v1672_v3 = vld [vmem:[#allocation8 + $0x388] sm:$0xff] }
 0x64e   : > { %3288 = vmatprep.subr.bf16.mxu0 %v3545_v27 }
 0x651   : > { %3289 = vmatpush3.bf16.msra.mxu0 %v3545_v27 }
 0x652   : > { %3290 = vmatprep.subr.bf16.mxu0 %v3546_v50 }
 0x654   : > { %3243 = vmatmul.mubr.bf16.gmra.mrb[60].mxu0 %v3635_v36 }
 0x655   : > { %3291 = vmatpush3.bf16.msra.mxu0 %v3546_v50 }
 0x656   : > { %3292 = vmatprep.subr.bf16.mxu0 %v3547_v13 }
 0x659   : > { %3293 = vmatpush3.bf16.msra.mxu0 %v3547_v13  ;;  %v1686_v13 = vld [vmem:[#allocation8 + $0x3f8] sm:$0xff] }
 0x70f   : > { %v3232_v38 = vpop.f32.mrb[48].mxu0 }
 0x710   : > { %v1631_v54 = vadd.f32 %v3232_v38, %v1615_v19  ;;  %v1533_v41 = vpop.f32.mrb[49].mxu0 }
 0x711   : > { %v1629_v8 = vadd.f32 %v1613_v52, %v1533_v41  ;;  %v3233_v40 = vpop.f32.mrb[50].mxu0  ;;  %v1610_v52 = vld [vmem:[#allocation8 + $0x168] sm:$0xff] }
 0x712   : > { %v1632_v6 = vadd.f32 %v3233_v40, %v1616_v48  ;;  %v1536_v49 = vpop.f32.mrb[51].mxu0 }
 0x713   : > { %v1630_v62 = vadd.f32 %v1614_v43, %v1536_v49  ;;  %v3552_v49 = vld [vmem:[#allocation7 + $0x1a0] sm:$0xff]  }
 0x714   : > { %v1646_v31 = vpack.c.bf16 %v1632_v6, %v1631_v54 }
 0x715   : > { %v1645_v33 = vpack.c.bf16 %v1630_v62, %v1629_v8  ;;  %v1626_v8 = vmul.f32 %v1610_v52, %v1488_v14  ;;  %v3551_v14 = vld [vmem:[#allocation7 + $0x198] sm:$0xff]   ;;  %v3553_v62 = vld [vmem:[#allocation7 + $0x1a8] sm:$0xff]  }
 0x716   : > { %v1680_v52 = vld [vmem:[#allocation8 + $0x3c8] sm:$0xff] }
 0x717   : > { %v3236_v63 = vpop.f32.mrb[52].mxu0  ;;  %3262 = vmatprep.mubr.bf16.mxu1 %v1645_v33  ;;  %v1674_v33 = vld [vmem:[#allocation8 + $0x398] sm:$0xff] }
 0x718   : > { %v1635_v57 = vadd.f32 %v3236_v63, %v1619_v55  ;;  %v1549_v60 = vpop.f32.mrb[53].mxu0  ;;  %3263 = vmatmul.mubr.bf16.vlgmr.msra.gmra.mrb[48].mxu1 %v1646_v31  ;;  %v1671_v31 = vld [vmem:[#allocation8 + $0x380] sm:$0xff] }
 0x719   : > { %v1633_v61 = vadd.f32 %v1617_v56, %v1549_v60  ;;  %v3237_v5 = vpop.f32.mrb[54].mxu0  ;;  %3311 = vmatpush3.bf16.msra.mxu1 %v3548_v45 }
 0x71a   : > { %v1636_v36 = vadd.f32 %v3237_v5, %v1620_v32  ;;  %v1552_v35 = vpop.f32.mrb[55].mxu0  ;;  %3312 = vmatprep.subr.bf16.mxu1 %v3549_v42 }
 0x71b   : > { %v1634_v25 = vadd.f32 %v1618_v34, %v1552_v35  ;;  %v1677_v35 = vld [vmem:[#allocation8 + $0x3b0] sm:$0xff] }
 0x71c   : > { %v1648_v23 = vpack.c.bf16 %v1636_v36, %v1635_v57 }
 0x71d   : > { %v1647_v2 = vpack.c.bf16 %v1634_v25, %v1633_v61  ;;  %3313 = vmatpush3.bf16.msra.mxu1 %v3549_v42 }
 0x71e   : > { %3314 = vmatprep.subr.bf16.mxu1 %v3550_v47 }
 0x71f   : > { %v3240_v21 = vpop.f32.mrb[56].mxu0  ;;  %3266 = vmatprep.mubr.bf16.mxu1 %v1647_v2  ;;  %v1678_v2 = vld [vmem:[#allocation8 + $0x3b8] sm:$0xff] }
 0x720   : > { %v1639_v1 = vadd.f32 %v3240_v21, %v1623_v26  ;;  %v1565_v22 = vpop.f32.mrb[57].mxu0  ;;  %3267 = vmatmul.mubr.bf16.gmra.mrb[52].mxu1 %v1648_v23 }
 0x721   : > { %v1637_v11 = vadd.f32 %v1621_v24, %v1565_v22  ;;  %v3241_v27 = vpop.f32.mrb[58].mxu0  ;;  %3315 = vmatpush3.bf16.msra.mxu1 %v3550_v47  ;;  %v1684_v47 = vld [vmem:[#allocation8 + $0x3e8] sm:$0xff] }
 0x722   : > { %v1640_v16 = vadd.f32 %v3241_v27, %v1624_v9  ;;  %v1568_v0 = vpop.f32.mrb[59].mxu0  ;;  %3316 = vmatprep.subr.bf16.mxu1 %v3551_v14 }
 0x723   : > { %v1638_v17 = vadd.f32 %v1622_v12, %v1568_v0  ;;  %v1681_v0 = vld [vmem:[#allocation8 + $0x3d0] sm:$0xff] }
 0x724   : > { %v1650_v19 = vpack.c.bf16 %v1640_v16, %v1639_v1 }
 0x725   : > { %v1649_v38 = vpack.c.bf16 %v1638_v17, %v1637_v11  ;;  %3317 = vmatpush3.bf16.msra.mxu1 %v3551_v14 }
 0x726   : > { %3318 = vmatprep.subr.bf16.mxu1 %v3552_v49 }
 0x727   : > { %v3244_v54 = vpop.f32.mrb[60].mxu0  ;;  %3270 = vmatprep.mubr.bf16.mxu1 %v1649_v38  ;;  %v1682_v38 = vld [vmem:[#allocation8 + $0x3d8] sm:$0xff] }
 0x728   : > { %v1643_v30 = vadd.f32 %v3244_v54, %v1627_v44  ;;  %v1581_v7 = vpop.f32.mrb[61].mxu0  ;;  %3271 = vmatmul.mubr.bf16.gmra.mrb[56].mxu1 %v1650_v19 }
 0x729   : > { %v1641_v41 = vadd.f32 %v1625_v28, %v1581_v7  ;;  %v3245_v48 = vpop.f32.mrb[62].mxu0  ;;  %3319 = vmatpush3.bf16.msra.mxu1 %v3552_v49 }
 0x72a   : > { %v1644_v40 = vadd.f32 %v3245_v48, %v1628_v53  ;;  %v1584_v39 = vpop.f32.mrb[63].mxu0  ;;  %3320 = vmatprep.subr.bf16.mxu1 %v3553_v62 }
 0x72b   : > { %v1642_v51 = vadd.f32 %v1626_v8, %v1584_v39  ;;  %v1685_v39 = vld [vmem:[#allocation8 + $0x3f0] sm:$0xff] }
 0x72c   : > { %v1652_v43 = vpack.c.bf16 %v1644_v40, %v1643_v30 }
 0x72d   : > { %v1651_v6 = vpack.c.bf16 %v1642_v51, %v1641_v41  ;;  %3321 = vmatpush3.bf16.msra.mxu1 %v3553_v62 }
 0x72f   : > { %3274 = vmatprep.mubr.bf16.mxu1 %v1651_v6 }
 0x730   : > { %3275 = vmatmul.mubr.bf16.gmra.mrb[60].mxu1 %v1652_v43  ;;  %v1683_v43 = vld [vmem:[#allocation8 + $0x3e0] sm:$0xff] }
 0x7eb   : > { %v3264_v58 = vpop.f32.mrb[48].mxu1 }
 0x7ec   : > { %v1778_v59 = vadd.f32 %v3264_v58, %v1673_v46  ;;  %v1769_v55 = vpop.f32.mrb[49].mxu1 }
 0x7ed   : > { %v1770_v63 = vadd.f32 %v1769_v55, %v1671_v31  ;;  %v3265_v56 = vpop.f32.mrb[50].mxu1 }
 0x7ee   : > { %v1781_v57 = vadd.f32 %v3265_v56, %v1674_v33  ;;  %v1772_v60 = vpop.f32.mrb[51].mxu1  ;;  %v1834_v61 = vmax.f32 %v1778_v59, 0.0  ;;  %v3554_v56 = vld [vmem:[#allocation7 + $0x1b0] sm:$0xff]  }
 0x7ef   : > { %v1773_v32 = vadd.f32 %v1772_v60, %v1672_v3  ;;  %v1832_v34 = vmax.f32 %v1770_v63, 0.0  ;;  %3322 = vmatprep.subr.bf16.mxu1 %v3554_v56  ;;  %v3556_v60 = vld [vmem:[#allocation7 + $0x1c0] sm:$0xff]  }
 0x7f0   : > { %v1835_v5 = vmax.f32 %v1781_v57, 0.0  ;;  %3323 = vmatpush3.bf16.msra.mxu1 %v3554_v56  ;;  %v3555_v57 = vld [vmem:[#allocation7 + $0x1b8] sm:$0xff]   ;;  %3342 = vmatprep.subr.bf16.mxu0 %v3556_v60 }
 0x7f1   : > { %v1833_v36 = vmax.f32 %v1773_v32, 0.0  ;;  %3324 = vmatprep.subr.bf16.mxu1 %v3555_v57  ;;  %v3557_v32 = vld [vmem:[#allocation7 + $0x1c8] sm:$0xff]  }
 0x7f2   : > { %v1849_v25 = vpack.c.bf16 %v1835_v5, %v1834_v61  ;;  %v4539_v61 = vld [vmem:[#allocation7 + $0x1d0] sm:$0xff]   ;;  %v4542_v5 = vld [vmem:[#allocation7 + $0x1d8] sm:$0xff]  }
 0x7f3   : > { %v1848_v23 = vpack.c.bf16 %v1833_v36, %v1832_v34  ;;  %v3268_v20 = vpop.f32.mrb[52].mxu1  ;;  %v4546_v34 = vld [vmem:[#allocation7 + $0x1e0] sm:$0xff]   ;;  %v4550_v36 = vld [vmem:[#allocation7 + $0x1e8] sm:$0xff]  }
 0x7f4   : > { %v1794_v4 = vadd.f32 %v3268_v20, %v1677_v35  ;;  %v1785_v26 = vpop.f32.mrb[53].mxu1  ;;  %3325 = vmatpush3.bf16.msra.mxu1 %v3555_v57  ;;  %v1876_v35 = vld [vmem:[#allocation8 + $0x410] sm:$0xff]  ;;  %v1889_v57 = vld [vmem:[#allocation8 + $0x478] sm:$0xff] }
 0x7f5   : > { %v1786_v21 = vadd.f32 %v1785_v26, %v1675_v37  ;;  %v3269_v24 = vpop.f32.mrb[54].mxu1  ;;  %3294 = vmatprep.mubr.bf16.mxu0 %v1848_v23  ;;  %3374 = vmatprep.subr.bf16.mxu1 %v3556_v60  ;;  %v1877_v23 = vld [vmem:[#allocation8 + $0x418] sm:$0xff] }
 0x7f6   : > { %v1797_v1 = vadd.f32 %v3269_v24, %v1678_v2  ;;  %v1788_v22 = vpop.f32.mrb[55].mxu1  ;;  %3295 = vmatmul.mubr.bf16.vlgmr.msra.gmra.mrb[64].mxu0 %v1849_v25  ;;  %v1838_v11 = vmax.f32 %v1794_v4, 0.0  ;;  %v1874_v25 = vld [vmem:[#allocation8 + $0x400] sm:$0xff]  ;;  %v1875_v4 = vld [vmem:[#allocation8 + $0x408] sm:$0xff] }
 0x7f7   : > { %v1789_v9 = vadd.f32 %v1788_v22, %v1676_v18  ;;  %v1836_v12 = vmax.f32 %v1786_v21, 0.0  ;;  %3343 = vmatpush3.bf16.msra.mxu0 %v3556_v60 }
 0x7f8   : > { %v1839_v27 = vmax.f32 %v1797_v1, 0.0  ;;  %3344 = vmatprep.subr.bf16.mxu0 %v3557_v32 }
 0x7f9   : > { %v1837_v16 = vmax.f32 %v1789_v9, 0.0 }
 0x7fa   : > { %v1851_v17 = vpack.c.bf16 %v1839_v27, %v1838_v11 }
 0x7fb   : > { %v1850_v19 = vpack.c.bf16 %v1837_v16, %v1836_v12  ;;  %v3272_v29 = vpop.f32.mrb[56].mxu1  ;;  %3345 = vmatpush3.bf16.msra.mxu0 %v3557_v32  ;;  %v1880_v12 = vld [vmem:[#allocation8 + $0x430] sm:$0xff] }
 0x7fc   : > { %v1810_v15 = vadd.f32 %v3272_v29, %v1681_v0  ;;  %v1801_v44 = vpop.f32.mrb[57].mxu1  ;;  %3346 = vmatprep.subr.bf16.mxu0 %v4539_v61  ;;  %v1878_v0 = vld [vmem:[#allocation8 + $0x420] sm:$0xff] }
 0x7fd   : > { %v1802_v54 = vadd.f32 %v1801_v44, %v1679_v10  ;;  %v3273_v28 = vpop.f32.mrb[58].mxu1  ;;  %3298 = vmatprep.mubr.bf16.mxu0 %v1850_v19  ;;  %v1881_v19 = vld [vmem:[#allocation8 + $0x438] sm:$0xff] }
 0x7fe   : > { %v1813_v30 = vadd.f32 %v3273_v28, %v1682_v38  ;;  %v1804_v7 = vpop.f32.mrb[59].mxu1  ;;  %3299 = vmatmul.mubr.bf16.gmra.mrb[68].mxu0 %v1851_v17  ;;  %v1842_v41 = vmax.f32 %v1810_v15, 0.0  ;;  %v1879_v15 = vld [vmem:[#allocation8 + $0x428] sm:$0xff] }
 0x7ff   : > { %v1805_v53 = vadd.f32 %v1804_v7, %v1680_v52  ;;  %v1840_v8 = vmax.f32 %v1802_v54, 0.0  ;;  %3347 = vmatpush3.bf16.msra.mxu0 %v4539_v61 }
 0x800   : > { %v1843_v48 = vmax.f32 %v1813_v30, 0.0  ;;  %3348 = vmatprep.subr.bf16.mxu0 %v4542_v5 }
 0x801   : > { %v1841_v40 = vmax.f32 %v1805_v53, 0.0 }
 0x802   : > { %v1853_v51 = vpack.c.bf16 %v1843_v48, %v1842_v41 }
 0x803   : > { %v1852_v6 = vpack.c.bf16 %v1841_v40, %v1840_v8  ;;  %v3276_v50 = vpop.f32.mrb[60].mxu1  ;;  %3349 = vmatpush3.bf16.msra.mxu0 %v4542_v5  ;;  %v1884_v8 = vld [vmem:[#allocation8 + $0x450] sm:$0xff] }
 0x804   : > { %v1826_v45 = vadd.f32 %v3276_v50, %v1685_v39  ;;  %v1817_v42 = vpop.f32.mrb[61].mxu1  ;;  %3350 = vmatprep.subr.bf16.mxu0 %v4546_v34  ;;  %v1882_v39 = vld [vmem:[#allocation8 + $0x440] sm:$0xff] }
 0x805   : > { %v1818_v14 = vadd.f32 %v1817_v42, %v1683_v43  ;;  %v3277_v49 = vpop.f32.mrb[62].mxu1  ;;  %3302 = vmatprep.mubr.bf16.mxu0 %v1852_v6  ;;  %v1885_v6 = vld [vmem:[#allocation8 + $0x458] sm:$0xff] }
 0x806   : > { %v1829_v62 = vadd.f32 %v3277_v49, %v1686_v13  ;;  %v1820_v46 = vpop.f32.mrb[63].mxu1  ;;  %3303 = vmatmul.mubr.bf16.gmra.mrb[72].mxu0 %v1853_v51  ;;  %v1846_v58 = vmax.f32 %v1826_v45, 0.0  ;;  %v1883_v45 = vld [vmem:[#allocation8 + $0x448] sm:$0xff] }
 0x807   : > { %v1821_v31 = vadd.f32 %v1820_v46, %v1684_v47  ;;  %v1844_v59 = vmax.f32 %v1818_v14, 0.0  ;;  %3351 = vmatpush3.bf16.msra.mxu0 %v4546_v34 }
 0x808   : > { %v1847_v33 = vmax.f32 %v1829_v62, 0.0  ;;  %3352 = vmatprep.subr.bf16.mxu0 %v4550_v36 }
 0x809   : > { %v1845_v55 = vmax.f32 %v1821_v31, 0.0 }
 0x80a   : > { %v1855_v3 = vpack.c.bf16 %v1847_v33, %v1846_v58 }
 0x80b   : > { %v1854_v63 = vpack.c.bf16 %v1845_v55, %v1844_v59  ;;  %3353 = vmatpush3.bf16.msra.mxu0 %v4550_v36  ;;  %v1888_v59 = vld [vmem:[#allocation8 + $0x470] sm:$0xff] }
 0x80d   : > { %3306 = vmatprep.mubr.bf16.mxu0 %v1854_v63 }
 0x80e   : > { %3307 = vmatmul.mubr.bf16.gmra.mrb[76].mxu0 %v1855_v3  ;;  %v1886_v3 = vld [vmem:[#allocation8 + $0x460] sm:$0xff] }
 0x8c9   : > { %v3296_v37 = vpop.f32.mrb[64].mxu0 }
 0x8ca   : > { %v1981_v20 = vadd.f32 %v3296_v37, %v1876_v35  ;;  %v1972_v2 = vpop.f32.mrb[65].mxu0  ;;  %v1887_v35 = vld [vmem:[#allocation8 + $0x468] sm:$0xff] }
 0x8cb   : > { %v1973_v26 = vadd.f32 %v1972_v2, %v1874_v25  ;;  %v3297_v18 = vpop.f32.mrb[66].mxu0 }
 0x8cc   : > { %v1984_v21 = vadd.f32 %v3297_v18, %v1877_v23  ;;  %v1975_v24 = vpop.f32.mrb[67].mxu0  ;;  %v2037_v22 = vmax.f32 %v1981_v20, 0.0 }
 0x8cd   : > { %v1976_v1 = vadd.f32 %v1975_v24, %v1875_v4  ;;  %v2035_v11 = vmax.f32 %v1973_v26, 0.0  ;;  %v3562_v24 = vld [vmem:[#allocation7 + $0x1f0] sm:$0xff]  }
 0x8ce   : > { %v2038_v9 = vmax.f32 %v1984_v21, 0.0  ;;  %3354 = vmatprep.subr.bf16.mxu0 %v3562_v24 }
 0x8cf   : > { %v2036_v27 = vmax.f32 %v1976_v1, 0.0  ;;  %3355 = vmatpush3.bf16.msra.mxu0 %v3562_v24  ;;  %v3563_v1 = vld [vmem:[#allocation7 + $0x1f8] sm:$0xff]  }
 0x8d0   : > { %v2052_v16 = vpack.c.bf16 %v2038_v9, %v2037_v22  ;;  %3356 = vmatprep.subr.bf16.mxu0 %v3563_v1  ;;  %v2077_v22 = vld [vmem:[#allocation8 + $0x480] sm:$0xff] }
 0x8d1   : > { %v2051_v17 = vpack.c.bf16 %v2036_v27, %v2035_v11  ;;  %v3300_v10 = vpop.f32.mrb[68].mxu0  ;;  %v2080_v11 = vld [vmem:[#allocation8 + $0x498] sm:$0xff] }
 0x8d2   : > { %v1997_v29 = vadd.f32 %v3300_v10, %v1880_v12  ;;  %v1988_v38 = vpop.f32.mrb[69].mxu0 }
 0x8d3   : > { %v1989_v44 = vadd.f32 %v1988_v38, %v1878_v0  ;;  %v3301_v52 = vpop.f32.mrb[70].mxu0  ;;  %3326 = vmatprep.mubr.bf16.mxu1 %v2051_v17  ;;  %3357 = vmatpush3.bf16.msra.mxu0 %v3563_v1 }
 0x8d4   : > { %v2000_v54 = vadd.f32 %v3301_v52, %v1881_v19  ;;  %v1991_v28 = vpop.f32.mrb[71].mxu0  ;;  %3327 = vmatmul.mubr.bf16.vlgmr.msra.gmra.mrb[64].mxu1 %v2052_v16  ;;  %v2041_v7 = vmax.f32 %v1997_v29, 0.0  ;;  %v2078_v16 = vld [vmem:[#allocation8 + $0x488] sm:$0xff]  ;;  %v2083_v52 = vld [vmem:[#allocation8 + $0x4b0] sm:$0xff] }
 0x8d5   : > { %v1992_v30 = vadd.f32 %v1991_v28, %v1879_v15  ;;  %3382 = vmatpush3.bf16.msra.mxu1 %v3556_v60  ;;  %v2039_v41 = vmax.f32 %v1989_v44, 0.0  ;;  %v2081_v28 = vld [vmem:[#allocation8 + $0x4a0] sm:$0xff] }
 0x8d6   : > { %v2042_v53 = vmax.f32 %v2000_v54, 0.0  ;;  %3375 = vmatprep.subr.bf16.mxu1 %v3557_v32 }
 0x8d7   : > { %v2040_v48 = vmax.f32 %v1992_v30, 0.0 }
 0x8d8   : > { %v2054_v40 = vpack.c.bf16 %v2042_v53, %v2041_v7  ;;  %v2084_v53 = vld [vmem:[#allocation8 + $0x4b8] sm:$0xff] }
 0x8d9   : > { %v2053_v51 = vpack.c.bf16 %v2040_v48, %v2039_v41  ;;  %v3304_v43 = vpop.f32.mrb[72].mxu0  ;;  %3383 = vmatpush3.bf16.msra.mxu1 %v3557_v32 }
 0x8da   : > { %v2013_v50 = vadd.f32 %v3304_v43, %v1884_v8  ;;  %v2004_v13 = vpop.f32.mrb[73].mxu0  ;;  %3376 = vmatprep.subr.bf16.mxu1 %v4539_v61  ;;  %v2082_v8 = vld [vmem:[#allocation8 + $0x4a8] sm:$0xff] }
 0x8db   : > { %v2005_v42 = vadd.f32 %v2004_v13, %v1882_v39  ;;  %v3305_v47 = vpop.f32.mrb[74].mxu0  ;;  %3330 = vmatprep.mubr.bf16.mxu1 %v2053_v51 }
 0x8dc   : > { %v2016_v14 = vadd.f32 %v3305_v47, %v1885_v6  ;;  %v2007_v49 = vpop.f32.mrb[75].mxu0  ;;  %3331 = vmatmul.mubr.bf16.gmra.mrb[68].mxu1 %v2054_v40  ;;  %v2045_v46 = vmax.f32 %v2013_v50, 0.0  ;;  %v2087_v47 = vld [vmem:[#allocation8 + $0x4d0] sm:$0xff] }
 0x8dd   : > { %v2008_v62 = vadd.f32 %v2007_v49, %v1883_v45  ;;  %3384 = vmatpush3.bf16.msra.mxu1 %v4539_v61  ;;  %v2043_v58 = vmax.f32 %v2005_v42, 0.0  ;;  %v2085_v49 = vld [vmem:[#allocation8 + $0x4c0] sm:$0xff] }
 0x8de   : > { %v2046_v31 = vmax.f32 %v2016_v14, 0.0  ;;  %3377 = vmatprep.subr.bf16.mxu1 %v4542_v5 }
 0x8df   : > { %v2044_v33 = vmax.f32 %v2008_v62, 0.0 }
 0x8e0   : > { %v2056_v55 = vpack.c.bf16 %v2046_v31, %v2045_v46  ;;  %v2088_v31 = vld [vmem:[#allocation8 + $0x4d8] sm:$0xff] }
 0x8e1   : > { %v2055_v63 = vpack.c.bf16 %v2044_v33, %v2043_v58  ;;  %v3308_v56 = vpop.f32.mrb[76].mxu0  ;;  %3385 = vmatpush3.bf16.msra.mxu1 %v4542_v5 }
 0x8e2   : > { %v2029_v60 = vadd.f32 %v3308_v56, %v1888_v59  ;;  %v2020_v32 = vpop.f32.mrb[77].mxu0  ;;  %3378 = vmatprep.subr.bf16.mxu1 %v4546_v34  ;;  %v2086_v59 = vld [vmem:[#allocation8 + $0x4c8] sm:$0xff] }
 0x8e3   : > { %v2021_v61 = vadd.f32 %v2020_v32, %v1886_v3  ;;  %v3309_v25 = vpop.f32.mrb[78].mxu0  ;;  %3334 = vmatprep.mubr.bf16.mxu1 %v2055_v63 }
 0x8e4   : > { %v2032_v37 = vadd.f32 %v3309_v25, %v1889_v57  ;;  %v2023_v23 = vpop.f32.mrb[79].mxu0  ;;  %3335 = vmatmul.mubr.bf16.gmra.mrb[72].mxu1 %v2056_v55  ;;  %v2049_v2 = vmax.f32 %v2029_v60, 0.0  ;;  %v2091_v25 = vld [vmem:[#allocation8 + $0x4f0] sm:$0xff] }
 0x8e5   : > { %v2024_v20 = vadd.f32 %v2023_v23, %v1887_v35  ;;  %3386 = vmatpush3.bf16.msra.mxu1 %v4546_v34  ;;  %v2047_v26 = vmax.f32 %v2021_v61, 0.0  ;;  %v2079_v34 = vld [vmem:[#allocation8 + $0x490] sm:$0xff]  ;;  %v2089_v23 = vld [vmem:[#allocation8 + $0x4e0] sm:$0xff] }
 0x8e6   : > { %v2050_v4 = vmax.f32 %v2032_v37, 0.0  ;;  %3379 = vmatprep.subr.bf16.mxu1 %v4550_v36 }
 0x8e7   : > { %v2048_v5 = vmax.f32 %v2024_v20, 0.0 }
 0x8e8   : > { %v2058_v18 = vpack.c.bf16 %v2050_v4, %v2049_v2  ;;  %v2092_v4 = vld [vmem:[#allocation8 + $0x4f8] sm:$0xff] }
 0x8e9   : > { %v2057_v21 = vpack.c.bf16 %v2048_v5, %v2047_v26  ;;  %3387 = vmatpush3.bf16.msra.mxu1 %v4550_v36 }
 0x8ea   : > { %3380 = vmatprep.subr.bf16.mxu1 %v3562_v24 }
 0x8eb   : > { %3338 = vmatprep.mubr.bf16.mxu1 %v2057_v21 }
 0x8ec   : > { %3339 = vmatmul.mubr.bf16.gmra.mrb[76].mxu1 %v2058_v18  ;;  %v2090_v18 = vld [vmem:[#allocation8 + $0x4e8] sm:$0xff] }
 0x8ed   : > { %3388 = vmatpush3.bf16.msra.mxu1 %v3562_v24 }
 0x8ee   : > { %3381 = vmatprep.subr.bf16.mxu1 %v3563_v1 }
 0x8f1   : > { %3389 = vmatpush3.bf16.msra.mxu1 %v3563_v1 }
 0x9a7   : > { %v3328_v9 = vpop.f32.mrb[64].mxu1 }
 0x9a8   : > { %v2184_v27 = vadd.f32 %v3328_v9, %v2079_v34  ;;  %v2175_v12 = vpop.f32.mrb[65].mxu1 }
 0x9a9   : > { %v2176_v36 = vadd.f32 %v2175_v12, %v2077_v22  ;;  %v3329_v0 = vpop.f32.mrb[66].mxu1 }
 0x9aa   : > { %v2187_v17 = vadd.f32 %v3329_v0, %v2080_v11  ;;  %v2178_v10 = vpop.f32.mrb[67].mxu1  ;;  %v2240_v29 = vmax.f32 %v2184_v27, 0.0  ;;  %v2282_v0 = vld [vmem:[#allocation8 + $0x510] sm:$0xff] }
 0x9ab   : > { %v2179_v19 = vadd.f32 %v2178_v10, %v2078_v16  ;;  %v2238_v15 = vmax.f32 %v2176_v36, 0.0 }
 0x9ac   : > { %v2241_v38 = vmax.f32 %v2187_v17, 0.0  ;;  %v2280_v17 = vld [vmem:[#allocation8 + $0x500] sm:$0xff] }
 0x9ad   : > { %v2239_v44 = vmax.f32 %v2179_v19, 0.0 }
 0x9ae   : > { %v2255_v54 = vpack.c.bf16 %v2241_v38, %v2240_v29 }
 0x9af   : > { %v2254_v30 = vpack.c.bf16 %v2239_v44, %v2238_v15  ;;  %v3332_v7 = vpop.f32.mrb[68].mxu1  ;;  %v2283_v15 = vld [vmem:[#allocation8 + $0x518] sm:$0xff] }
 0x9b0   : > { %v2200_v41 = vadd.f32 %v3332_v7, %v2083_v52  ;;  %v2191_v48 = vpop.f32.mrb[69].mxu1  ;;  %v2286_v7 = vld [vmem:[#allocation8 + $0x530] sm:$0xff] }
 0x9b1   : > { %v2192_v40 = vadd.f32 %v2191_v48, %v2081_v28  ;;  %v3333_v39 = vpop.f32.mrb[70].mxu1  ;;  %3358 = vmatprep.mubr.bf16.mxu0 %v2254_v30 }
 0x9b2   : > { %v2203_v51 = vadd.f32 %v3333_v39, %v2084_v53  ;;  %v2194_v43 = vpop.f32.mrb[71].mxu1  ;;  %3359 = vmatmul.mubr.bf16.vlgmr.msra.gmra.mrb[80].mxu0 %v2255_v54  ;;  %v2244_v50 = vmax.f32 %v2200_v41, 0.0  ;;  %v2281_v54 = vld [vmem:[#allocation8 + $0x508] sm:$0xff]  ;;  %v2287_v41 = vld [vmem:[#allocation8 + $0x538] sm:$0xff]  ;;  %v2284_v39 = vld [vmem:[#allocation8 + $0x520] sm:$0xff] }
 0x9b3   : > { %v2195_v6 = vadd.f32 %v2194_v43, %v2082_v8  ;;  %v2242_v45 = vmax.f32 %v2192_v40, 0.0 }
 0x9b4   : > { %v2245_v13 = vmax.f32 %v2203_v51, 0.0 }
 0x9b5   : > { %v2243_v42 = vmax.f32 %v2195_v6, 0.0  ;;  %v2285_v6 = vld [vmem:[#allocation8 + $0x528] sm:$0xff] }
 0x9b6   : > { %v2257_v14 = vpack.c.bf16 %v2245_v13, %v2244_v50  ;;  %v2290_v13 = vld [vmem:[#allocation8 + $0x550] sm:$0xff] }
 0x9b7   : > { %v2256_v62 = vpack.c.bf16 %v2243_v42, %v2242_v45  ;;  %v3336_v46 = vpop.f32.mrb[72].mxu1 }
 0x9b8   : > { %v2216_v58 = vadd.f32 %v3336_v46, %v2087_v47  ;;  %v2207_v33 = vpop.f32.mrb[73].mxu1  ;;  %v2291_v47 = vld [vmem:[#allocation8 + $0x558] sm:$0xff]  ;;  %v2288_v46 = vld [vmem:[#allocation8 + $0x540] sm:$0xff] }
 0x9b9   : > { %v2208_v55 = vadd.f32 %v2207_v33, %v2085_v49  ;;  %v3337_v3 = vpop.f32.mrb[74].mxu1  ;;  %3362 = vmatprep.mubr.bf16.mxu0 %v2256_v62  ;;  %v2289_v33 = vld [vmem:[#allocation8 + $0x548] sm:$0xff] }
 0x9ba   : > { %v2219_v63 = vadd.f32 %v3337_v3, %v2088_v31  ;;  %v2210_v56 = vpop.f32.mrb[75].mxu1  ;;  %3363 = vmatmul.mubr.bf16.gmra.mrb[84].mxu0 %v2257_v14  ;;  %v2248_v60 = vmax.f32 %v2216_v58, 0.0  ;;  %v2292_v3 = vld [vmem:[#allocation8 + $0x560] sm:$0xff] }
 0x9bb   : > { %v2211_v57 = vadd.f32 %v2210_v56, %v2086_v59  ;;  %v2246_v35 = vmax.f32 %v2208_v55, 0.0 }
 0x9bc   : > { %v2249_v32 = vmax.f32 %v2219_v63, 0.0 }
 0x9bd   : > { %v2247_v61 = vmax.f32 %v2211_v57, 0.0  ;;  %v2293_v57 = vld [vmem:[#allocation8 + $0x568] sm:$0xff] }
 0x9be   : > { %v2259_v37 = vpack.c.bf16 %v2249_v32, %v2248_v60 }
 0x9bf   : > { %v2258_v20 = vpack.c.bf16 %v2247_v61, %v2246_v35  ;;  %v3340_v2 = vpop.f32.mrb[76].mxu1  ;;  %v2294_v35 = vld [vmem:[#allocation8 + $0x570] sm:$0xff] }
 0x9c0   : > { %v2232_v26 = vadd.f32 %v3340_v2, %v2091_v25  ;;  %v2223_v5 = vpop.f32.mrb[77].mxu1 }
 0x9c1   : > { %v2224_v21 = vadd.f32 %v2223_v5, %v2089_v23  ;;  %v3341_v24 = vpop.f32.mrb[78].mxu1  ;;  %3366 = vmatprep.mubr.bf16.mxu1 %v2258_v20 }
 0x9c2   : > { %v2235_v1 = vadd.f32 %v3341_v24, %v2092_v4  ;;  %v2226_v34 = vpop.f32.mrb[79].mxu1  ;;  %3367 = vmatmul.mubr.bf16.vlgmr.msra.gmra.mrb[80].mxu1 %v2259_v37  ;;  %v2252_v9 = vmax.f32 %v2232_v26, 0.0  ;;  %v2295_v37 = vld [vmem:[#allocation8 + $0x578] sm:$0xff] }
 0x9c3   : > { %v2227_v22 = vadd.f32 %v2226_v34, %v2090_v18  ;;  %v2250_v27 = vmax.f32 %v2224_v21, 0.0 }
 0x9c4   : > { %v2253_v11 = vmax.f32 %v2235_v1, 0.0 }
 0x9c5   : > { %v2251_v12 = vmax.f32 %v2227_v22, 0.0 }
 0x9c6   : > { %v2261_v16 = vpack.c.bf16 %v2253_v11, %v2252_v9 }
 0x9c7   : > { %v2260_v36 = vpack.c.bf16 %v2251_v12, %v2250_v27 }
 0x9c9   : > { %3370 = vmatprep.mubr.bf16.mxu1 %v2260_v36 }
 0x9ca   : > { %3371 = vmatmul.mubr.bf16.gmra.mrb[84].mxu1 %v2261_v16 }
 0xa85   : > { %v3360_v10 = vpop.f32.mrb[80].mxu0 }
 0xa86   : > { %v2387_v19 = vadd.f32 %v3360_v10, %v2282_v0  ;;  %v2378_v29 = vpop.f32.mrb[81].mxu0 }
 0xa87   : > { %v2379_v38 = vadd.f32 %v2378_v29, %v2280_v17  ;;  %v3361_v44 = vpop.f32.mrb[82].mxu0 }
 0xa88   : > { %2445 = vmax.xlane.f32.xlu1 %v2387_v19  ;;  %v2381_v52 = vpop.f32.mrb[83].mxu0  ;;  %v2390_v28 = vadd.f32 %v3361_v44, %v2283_v15 }
 0xa89   : > { %2441 = vmax.xlane.f32.xlu0 %v2379_v38  ;;  %v2382_v30 = vadd.f32 %v2381_v52, %v2281_v54 }
 0xa8c   : > { %2447 = vmax.xlane.f32.xlu1 %v2390_v28 }
 0xa8d   : > { %v3364_v53 = vpop.f32.mrb[84].mxu0  ;;  %2443 = vmax.xlane.f32.xlu0 %v2382_v30 }
 0xa8e   : > { %v2403_v48 = vadd.f32 %v3364_v53, %v2286_v7  ;;  %v2394_v8 = vpop.f32.mrb[85].mxu0 }
 0xa8f   : > { %v3365_v40 = vpop.f32.mrb[86].mxu0  ;;  %v2395_v50 = vadd.f32 %v2394_v8, %v2284_v39 }
 0xa90   : > { %v2406_v51 = vadd.f32 %v3365_v40, %v2287_v41  ;;  %v2397_v43 = vpop.f32.mrb[87].mxu0 }
 0xa91   : > { %2453 = vmax.xlane.f32.xlu0 %v2403_v48  ;;  %v2398_v45 = vadd.f32 %v2397_v43, %v2285_v6 }
 0xa92   : > { %2455 = vmax.xlane.f32.xlu1 %v2406_v51 }
 0xa95   : > { %2449 = vmax.xlane.f32.xlu0 %v2395_v50  ;;  %v3368_v42 = vpop.f32.mrb[80].mxu1 }
 0xa96   : > { %v4563_v14 = vadd.f32 %v3368_v42, %v2290_v13  ;;  %2451 = vmax.xlane.f32.xlu1 %v2398_v45  ;;  %v2410_v49 = vpop.f32.mrb[81].mxu1 }
 0xa97   : > { %v3369_v62 = vpop.f32.mrb[82].mxu1  ;;  %v4569_v59 = vadd.f32 %v2410_v49, %v2288_v46 }
 0xa98   : > { %v4565_v31 = vadd.f32 %v3369_v62, %v2291_v47  ;;  %v2413_v58 = vpop.f32.mrb[83].mxu1 }
 0xa99   : > { %2461 = vmax.xlane.f32.xlu0 %v4563_v14  ;;  %v4571_v55 = vadd.f32 %v2413_v58, %v2289_v33 }
 0xa9a   : > { %2463 = vmax.xlane.f32.xlu1 %v4565_v31 }
 0xa9d   : > { %2457 = vmax.xlane.f32.xlu0 %v4569_v59  ;;  %v3372_v63 = vpop.f32.mrb[84].mxu1 }
 0xa9e   : > { %2459 = vmax.xlane.f32.xlu1 %v4571_v55  ;;  %v2426_v56 = vpop.f32.mrb[85].mxu1  ;;  %v4580_v23 = vadd.f32 %v3372_v63, %v2294_v35 }
 0xa9f   : > { %v4575_v60 = vadd.f32 %v2426_v56, %v2292_v3  ;;  %v3373_v32 = vpop.f32.mrb[86].mxu1 }
 0xaa0   : > { %v2429_v61 = vpop.f32.mrb[87].mxu1  ;;  %v4583_v20 = vadd.f32 %v3373_v32, %v2295_v37 }
 0xaa1   : > { %v4577_v25 = vadd.f32 %v2429_v61, %v2293_v57  ;;  %2465 = vmax.xlane.f32.xlu0 %v4575_v60 }
 0xaa3   : > { %2467 = vmax.xlane.f32.xlu1 %v4577_v25 }
 0xaa5   : > { %2469 = vmax.xlane.f32.xlu0 %v4580_v23 }
 0xaa7   : > { %2471 = vmax.xlane.f32.xlu1 %v4583_v20 }
 0xb15   : > { %v2446_v2 = vpop.xlane.xlu1 %2445 }
 0xb16   : > { %v4587_v4 = vsub.f32 %v2387_v19, %v2446_v2  ;;  %v2442_v26 = vpop.xlane.xlu0 %2441 }
 0xb17   : > { %v4589_v5 = vsub.f32 %v2379_v38, %v2442_v26 }
 0xb18   : > { %v2493_v18 = vmul.f32 1.442695, %v4587_v4 }
 0xb19   : > { %v2489_v21 = vmul.f32 1.442695, %v4589_v5  ;;  %v2448_v24 = vpop.xlane.xlu1 %2447 }
 0xb1a   : > { %3564 = vpow2.f32 %v2493_v18  ;;  %v4593_v1 = vsub.f32 %v2390_v28, %v2448_v24  ;;  %v2444_v34 = vpop.xlane.xlu0 %2443 }
 0xb1b   : > { %v4595_v22 = vsub.f32 %v2382_v30, %v2444_v34  ;;  %3566 = vpow2.f32 %v2489_v21 }
 0xb1c   : > { %v2495_v9 = vmul.f32 1.442695, %v4593_v1 }
 0xb1d   : > { %v2491_v11 = vmul.f32 1.442695, %v4595_v22 }
 0xb1e   : > { %3568 = vpow2.f32 %v2495_v9  ;;  %v2454_v27 = vpop.xlane.xlu0 %2453 }
 0xb1f   : > { %v4599_v12 = vsub.f32 %v2403_v48, %v2454_v27  ;;  %v2456_v16 = vpop.xlane.xlu1 %2455  ;;  %3570 = vpow2.f32 %v2491_v11 }
 0xb20   : > { %v4601_v36 = vsub.f32 %v2406_v51, %v2456_v16 }
 0xb21   : > { %v2501_v0 = vmul.f32 1.442695, %v4599_v12 }
 0xb22   : > { %v2503_v17 = vmul.f32 1.442695, %v4601_v36  ;;  %v2450_v10 = vpop.xlane.xlu0 %2449 }
 0xb23   : > { %3572 = vpow2.f32 %v2501_v0  ;;  %v4605_v19 = vsub.f32 %v2395_v50, %v2450_v10  ;;  %v2452_v29 = vpop.xlane.xlu1 %2451 }
 0xb24   : > { %v3565_v38 = vpop.eup %3564  ;;  %v4607_v15 = vsub.f32 %v2398_v45, %v2452_v29  ;;  %3574 = vpow2.f32 %v2503_v17 }
 0xb25   : > { %v2497_v44 = vmul.f32 1.442695, %v4605_v19  ;;  %2525 = vadd.xlane.f32.xlu0 %v3565_v38  ;;  %v3567_v28 = vpop.eup %3566 }
 0xb26   : > { %v2499_v52 = vmul.f32 1.442695, %v4607_v15  ;;  %v2462_v54 = vpop.xlane.xlu0 %2461 }
 0xb27   : > { %3576 = vpow2.f32 %v2497_v44  ;;  %v4612_v30 = vsub.f32 %v4563_v14, %v2462_v54  ;;  %v2464_v7 = vpop.xlane.xlu1 %2463 }
 0xb28   : > { %v3569_v53 = vpop.eup %3568  ;;  %v4615_v41 = vsub.f32 %v4565_v31, %v2464_v7  ;;  %3578 = vpow2.f32 %v2499_v52 }
 0xb29   : > { %v2509_v48 = vmul.f32 1.442695, %v4612_v30  ;;  %2527 = vadd.xlane.f32.xlu1 %v3569_v53  ;;  %2521 = vadd.xlane.f32.xlu0 %v3567_v28  ;;  %v3571_v43 = vpop.eup %3570 }
 0xb2a   : > { %v2511_v8 = vmul.f32 1.442695, %v4615_v41  ;;  %v2458_v40 = vpop.xlane.xlu0 %2457 }
 0xb2b   : > { %3580 = vpow2.f32 %v2509_v48  ;;  %v4620_v39 = vsub.f32 %v4569_v59, %v2458_v40  ;;  %v2460_v51 = vpop.xlane.xlu1 %2459 }
 0xb2c   : > { %v4623_v6 = vsub.f32 %v4571_v55, %v2460_v51  ;;  %3582 = vpow2.f32 %v2511_v8 }
 0xb2d   : > { %v3573_v50 = vpop.eup %3572  ;;  %v2505_v13 = vmul.f32 1.442695, %v4620_v39  ;;  %2523 = vadd.xlane.f32.xlu1 %v3571_v43 }
 0xb2e   : > { %v2507_v45 = vmul.f32 1.442695, %v4623_v6  ;;  %2533 = vadd.xlane.f32.xlu0 %v3573_v50  ;;  %v2466_v42 = vpop.xlane.xlu0 %2465  ;;  %v3575_v14 = vpop.eup %3574 }
 0xb2f   : > { %3584 = vpow2.f32 %v2505_v13  ;;  %v4628_v47 = vsub.f32 %v4575_v60, %v2466_v42 }
 0xb30   : > { %v2468_v49 = vpop.xlane.xlu1 %2467  ;;  %3586 = vpow2.f32 %v2507_v45 }
 0xb31   : > { %v3577_v62 = vpop.eup %3576  ;;  %v2513_v46 = vmul.f32 1.442695, %v4628_v47  ;;  %v4632_v31 = vsub.f32 %v4577_v25, %v2468_v49  ;;  %2535 = vadd.xlane.f32.xlu1 %v3575_v14 }
 0xb32   : > { %2529 = vadd.xlane.f32.xlu0 %v3577_v62  ;;  %v2470_v58 = vpop.xlane.xlu0 %2469  ;;  %v3579_v55 = vpop.eup %3578 }
 0xb33   : > { %3588 = vpow2.f32 %v2513_v46  ;;  %v2515_v33 = vmul.f32 1.442695, %v4632_v31  ;;  %v4636_v59 = vsub.f32 %v4580_v23, %v2470_v58 }
 0xb34   : > { %v2472_v3 = vpop.xlane.xlu1 %2471 }
 0xb35   : > { %v3581_v63 = vpop.eup %3580  ;;  %3590 = vpow2.f32 %v2515_v33  ;;  %v2517_v56 = vmul.f32 1.442695, %v4636_v59  ;;  %v4640_v57 = vsub.f32 %v4583_v20, %v2472_v3  ;;  %2531 = vadd.xlane.f32.xlu1 %v3579_v55 }
 0xb36   : > { %2541 = vadd.xlane.f32.xlu0 %v3581_v63  ;;  %v3583_v32 = vpop.eup %3582 }
 0xb37   : > { %3592 = vpow2.f32 %v2517_v56  ;;  %v2519_v60 = vmul.f32 1.442695, %v4640_v57 }
 0xb39   : > { %v3585_v35 = vpop.eup %3584  ;;  %3594 = vpow2.f32 %v2519_v60  ;;  %2543 = vadd.xlane.f32.xlu1 %v3583_v32 }
 0xb3a   : > { %2537 = vadd.xlane.f32.xlu0 %v3585_v35  ;;  %v3587_v61 = vpop.eup %3586 }
 0xb3d   : > { %v3589_v25 = vpop.eup %3588  ;;  %2539 = vadd.xlane.f32.xlu1 %v3587_v61 }
 0xb3e   : > { %2545 = vadd.xlane.f32.xlu0 %v3589_v25 }
 0xb3f   : > { %v3591_v37 = vpop.eup %3590 }
 0xb41   : > { %v3593_v23 = vpop.eup %3592  ;;  %2547 = vadd.xlane.f32.xlu1 %v3591_v37 }
 0xb42   : > { %2549 = vadd.xlane.f32.xlu0 %v3593_v23 }
 0xb43   : > { %v3595_v20 = vpop.eup %3594 }
 0xb45   : > { %2551 = vadd.xlane.f32.xlu1 %v3595_v20 }
 0xbb2   : > { %v2526_v2 = vpop.xlane.xlu0 %2525 }
 0xbb3   : > { %3596 = vlog2.f32 %v2526_v2 }
 0xbb6   : > { %v2528_v26 = vpop.xlane.xlu1 %2527  ;;  %v2522_v18 = vpop.xlane.xlu0 %2521 }
 0xbb7   : > { %3598 = vlog2.f32 %v2528_v26 }
 0xbb8   : > { %3600 = vlog2.f32 %v2522_v18 }
 0xbba   : > { %v2524_v21 = vpop.xlane.xlu1 %2523 }
 0xbbb   : > { %3602 = vlog2.f32 %v2524_v21  ;;  %v2534_v24 = vpop.xlane.xlu0 %2533 }
 0xbbc   : > { %3604 = vlog2.f32 %v2534_v24 }
 0xbbd   : > { %v3597_v34 = vpop.eup %3596 }
 0xbbe   : > { %v2558_v9 = vmul.f32 0.6931472, %v3597_v34  ;;  %v2536_v11 = vpop.xlane.xlu1 %2535 }
 0xbbf   : > { %3606 = vlog2.f32 %v2536_v11  ;;  %v2530_v27 = vpop.xlane.xlu0 %2529 }
 0xbc0   : > { %v2587_v16 = vsub.f32 %v4587_v4, %v2558_v9  ;;  %3608 = vlog2.f32 %v2530_v27 }
 0xbc1   : > { %v3599_v0 = vpop.eup %3598 }
 0xbc2   : > { %v3601_v17 = vpop.eup %3600  ;;  %2603 = vst [vmem:[%s4645_s24 + $0x10] sm:$0xff] %v2587_v16  ;;  %v2560_v10 = vmul.f32 0.6931472, %v3599_v0  ;;  %v2532_v29 = vpop.xlane.xlu1 %2531 }
 0xbc3   : > { %v2554_v38 = vmul.f32 0.6931472, %v3601_v17  ;;  %3610 = vlog2.f32 %v2532_v29  ;;  %v2542_v44 = vpop.xlane.xlu0 %2541 }
 0xbc4   : > { %v2588_v52 = vsub.f32 %v4593_v1, %v2560_v10  ;;  %3612 = vlog2.f32 %v2542_v44 }
 0xbc5   : > { %v3603_v54 = vpop.eup %3602  ;;  %v2585_v4 = vsub.f32 %v4589_v5, %v2554_v38 }
 0xbc6   : > { %v3605_v28 = vpop.eup %3604  ;;  %2604 = vst [vmem:[%s4645_s24 + $0x18] sm:$0xff] %v2588_v52  ;;  %v2556_v7 = vmul.f32 0.6931472, %v3603_v54  ;;  %v2544_v53 = vpop.xlane.xlu1 %2543 }
 0xbc7   : > { %2601 = vst [vmem:[%s4645_s24] sm:$0xff] %v2585_v4  ;;  %v2566_v48 = vmul.f32 0.6931472, %v3605_v28  ;;  %3614 = vlog2.f32 %v2544_v53  ;;  %v2538_v8 = vpop.xlane.xlu0 %2537 }
 0xbc8   : > { %v2586_v40 = vsub.f32 %v4595_v22, %v2556_v7  ;;  %3616 = vlog2.f32 %v2538_v8 }
 0xbc9   : > { %v3607_v51 = vpop.eup %3606  ;;  %v2591_v1 = vsub.f32 %v4599_v12, %v2566_v48 }
 0xbca   : > { %v3609_v43 = vpop.eup %3608  ;;  %2602 = vst [vmem:[%s4645_s24 + $0x8] sm:$0xff] %v2586_v40  ;;  %v2568_v5 = vmul.f32 0.6931472, %v3607_v51  ;;  %v2540_v50 = vpop.xlane.xlu1 %2539 }
 0xbcb   : > { %2607 = vst [vmem:[%s4645_s24 + $0x30] sm:$0xff] %v2591_v1  ;;  %v2562_v13 = vmul.f32 0.6931472, %v3609_v43  ;;  %3618 = vlog2.f32 %v2540_v50  ;;  %v2546_v45 = vpop.xlane.xlu0 %2545 }
 0xbcc   : > { %v2592_v42 = vsub.f32 %v4601_v36, %v2568_v5  ;;  %3620 = vlog2.f32 %v2546_v45 }
 0xbcd   : > { %v3611_v14 = vpop.eup %3610  ;;  %v2589_v22 = vsub.f32 %v4605_v19, %v2562_v13 }
 0xbce   : > { %v3613_v49 = vpop.eup %3612  ;;  %2608 = vst [vmem:[%s4645_s24 + $0x38] sm:$0xff] %v2592_v42  ;;  %v2564_v12 = vmul.f32 0.6931472, %v3611_v14  ;;  %v2548_v62 = vpop.xlane.xlu1 %2547 }
 0xbcf   : > { %2605 = vst [vmem:[%s4645_s24 + $0x20] sm:$0xff] %v2589_v22  ;;  %v2574_v46 = vmul.f32 0.6931472, %v3613_v49  ;;  %3622 = vlog2.f32 %v2548_v62  ;;  %v2550_v58 = vpop.xlane.xlu0 %2549 }
 0xbd0   : > { %v2590_v33 = vsub.f32 %v4607_v15, %v2564_v12  ;;  %3624 = vlog2.f32 %v2550_v58 }
 0xbd1   : > { %v3615_v36 = vpop.eup %3614  ;;  %v2595_v55 = vsub.f32 %v4612_v30, %v2574_v46 }
 0xbd2   : > { %v3617_v3 = vpop.eup %3616  ;;  %2606 = vst [vmem:[%s4645_s24 + $0x28] sm:$0xff] %v2590_v33  ;;  %v2576_v19 = vmul.f32 0.6931472, %v3615_v36  ;;  %v2552_v63 = vpop.xlane.xlu1 %2551 }
 0xbd3   : > { %2611 = vst [vmem:[%s4645_s24 + $0x50] sm:$0xff] %v2595_v55  ;;  %v2570_v56 = vmul.f32 0.6931472, %v3617_v3  ;;  %3626 = vlog2.f32 %v2552_v63 }
 0xbd4   : > { %v2596_v60 = vsub.f32 %v4615_v41, %v2576_v19 }
 0xbd5   : > { %v3619_v32 = vpop.eup %3618  ;;  %v2593_v15 = vsub.f32 %v4620_v39, %v2570_v56 }
 0xbd6   : > { %v3621_v35 = vpop.eup %3620  ;;  %2612 = vst [vmem:[%s4645_s24 + $0x58] sm:$0xff] %v2596_v60  ;;  %v2572_v61 = vmul.f32 0.6931472, %v3619_v32 }
 0xbd7   : > { %2609 = vst [vmem:[%s4645_s24 + $0x40] sm:$0xff] %v2593_v15  ;;  %v2578_v30 = vmul.f32 0.6931472, %v3621_v35 }
 0xbd8   : > { %v2594_v25 = vsub.f32 %v4623_v6, %v2572_v61 }
 0xbd9   : > { %v3623_v37 = vpop.eup %3622  ;;  %v2597_v23 = vsub.f32 %v4628_v47, %v2578_v30 }
 0xbda   : > { %v3625_v20 = vpop.eup %3624  ;;  %2610 = vst [vmem:[%s4645_s24 + $0x48] sm:$0xff] %v2594_v25  ;;  %v2580_v41 = vmul.f32 0.6931472, %v3623_v37 }
 0xbdb   : > { %2613 = vst [vmem:[%s4645_s24 + $0x60] sm:$0xff] %v2597_v23  ;;  %v2582_v39 = vmul.f32 0.6931472, %v3625_v20 }
 0xbdc   : > { %v2598_v2 = vsub.f32 %v4632_v31, %v2580_v41 }
 0xbdd   : > { %v3627_v26 = vpop.eup %3626  ;;  %v2599_v18 = vsub.f32 %v4636_v59, %v2582_v39 }
 0xbde   : > { %2614 = vst [vmem:[%s4645_s24 + $0x68] sm:$0xff] %v2598_v2  ;;  %v2584_v6 = vmul.f32 0.6931472, %v3627_v26 }
 0xbdf   : > { %2615 = vst [vmem:[%s4645_s24 + $0x70] sm:$0xff] %v2599_v18 }
 0xbe0   : > { %v2600_v47 = vsub.f32 %v4640_v57, %v2584_v6 }
 0xbe2   : > { %2616 = vst [vmem:[%s4645_s24 + $0x78] sm:$0xff] %v2600_v47 }
 0xbe3   : > { %3765 = shalt.err (!%p3762_p8)
}
 0xbe4   : > { %s3766_s5 = scalar_lea.hbm %s4681_s9, 2048  ;;  %s3770_s23 = scalar_lea.hbm %s4744_s4, 4096 }
 0xbe5   : > { %p3767_p1 = scmp.ne.s32.totalorder %s4681_s9, %s3766_s5  ;;  %p3771_p5 = scmp.lt.u32.totalorder %s4681_s9, %s4744_s4 }
 0xbe6   : > { %p3772_p2 = scmp.lt.u32.totalorder %s3770_s23, %s3766_s5  ;;  %p3774_p9 = scmp.lt.u32.totalorder %s3766_s5, %s4681_s9 }
 0xbe7   : > { %p3768_p10 = pnand %p3767_p1, %p4782_p0 }
 0xbe8   : > { %p3773_p12 = por %p3772_p2, %p3771_p5 }
 0xbe9   : > { %p3769_p7 = pneg %p3768_p10 }
 0xbea   : > { %p3775_p13 = por %p3774_p9, %p3773_p12 }
 0xbec   : > { %p3776_p11 = pnand %p3775_p13, %p3769_p7 }
 0xbee   : > { %3779 = shalt.err (!%p3776_p11)
}
 0xbef   : > { %s3865_s10 = smov 128   ;;  %s3866_s24 = smov 8  }
 0xbf0   : > { %3402 = dma.vmem_to_hbm [thread:$0]  (%p4782_p0), %s4683_s12, 2048, %s4681_s9, %s4689_s22, %s3865_s10, %s3865_s10, %s3866_s24  }
 0xbf1 PF: > { %s2646_s25 = sand.u32 1, %s3830_s15   ;;  %p4783_p3 = scmp.ne.s32.totalorder %s4760_s26, 0 }
 0xbf2   : > { %p4784_p6 = scmp.ge.s32.totalorder %s3854_s21, 2  ;;  %s2647_s18 = scalar_lea.sflag [#allocation4], %s2646_s25 }
 0xbf4   : > { %p3419_p4 = pnand %p4784_p6, %p4783_p3 }
 0xbf6   : > { %3825 = dma.done.wait (!%p3419_p4), %s2647_s18, 2048  }
 0xbf7   : > { %3827 = vsyncadd (!%p3419_p4), %s2647_s18, 4294965248  ;;  %p21_p0 = scmp.ge.s32.totalorder %s4028_s8, 4   ;;  %s4785_s15 = smov %s3834_s16 }
 0xbf8   : > { %s4786_s16 = smov %s3838_s17  ;;  %s4787_s17 = smov %s4100_s11 }
 0xbf9   : > { %s4788_s18 = smov %s3846_s19  ;;  %s4789_s19 = smov %s3850_s20 }
 0xbfa   : > { %s4790_s20 = smov %s4042_s30  ;;  %s4791_s21 = smov %s4028_s8 }
 0xbfb   :  { %23 = sbr.rel (!%p21_p0) target bundleno = 14 (0xe), region = 119 }
 0xc02   :  { %2652 = vsyncpa [#allocation3], 1 }
 0xc03   :  { %2654 = vsyncpa [#allocation3 + $0x1], 1 }
 0xc04   :  { %2655 = vsyncpa [#allocation6], 1 }
 0xc05   :  { %2657 = vsyncpa [#allocation6 + $0x1], 1 }
 0xc06   :  { %2658 = vsyncpa [#allocation9], 1 }
 0xc07   :  { %2659 = vsyncpa [#allocation4], 1 }
 0xc08   :  { %2661 = vsyncpa [#allocation4 + $0x1], 1 }

</bundles_post_ra>
